<compile_context>
chip_gen: v7x
topology: tpu7x:2x2x1
jax: 0.10.0
libtpu: 0.0.40
codegen_flags: <defaults>
</compile_context>

<pallas_src>
import functools

import jax
import jax.numpy as jnp
from jax.experimental import pallas as pl
from jax.experimental.pallas import tpu as pltpu


# --------------------------------------------------------------------------- #
# Kernel A: streaming reduction over the sequence + VAE head + losses.
# --------------------------------------------------------------------------- #
def _vae_reduce_kernel(x_ref, mask2_ref, w_enc_ref, w_vae_ref, w_dec_ref,
                       eps_ref, dec_ref, loss_ref, kl_ref,
                       acc_sums, acc_sq, *, seq_tile, total_seq, inv_n):
    s = pl.program_id(0)
    last = pl.num_programs(0) - 1

    @pl.when(s == 0)
    def _init():
        acc_sums[...] = jnp.zeros_like(acc_sums)
        acc_sq[...] = jnp.zeros_like(acc_sq)

    x = x_ref[...]                                        # (B, TS, D) native dtype
    start = pl.multiple_of(s * seq_tile, seq_tile)
    lhs = mask2_ref[:, :, pl.ds(start, seq_tile)]         # (B, 2, TS): [mask; ones]

    # One MXU contraction produces BOTH the masked (row 0) and the unmasked
    # (row 1) sums over this sequence tile; f32 accumulate.
    sums = jnp.einsum("bts,bsd->btd", lhs, x,
                      preferred_element_type=jnp.float32)  # (B, 2, D)
    acc_sums[...] += sums

    # sum(x^2): keep partial sums lane-resident; cross-lane reduce only once
    # in the finalize step (accuracy + fewer XLU reductions per tile).
    xf = x.astype(jnp.float32)
    acc_sq[...] += jnp.sum(xf * xf, axis=1)                # (B, D)

    @pl.when(s == last)
    def _finalize():
        lat = w_enc_ref.shape[1]                           # L (static)
        bsz = eps_ref.shape[0]                             # B (static)

        sums_f = acc_sums[...]
        masked_sum = sums_f[:, 0, :]                       # (B, D)
        plain_sum = sums_f[:, 1, :]                        # (B, D) unmasked

        # denominator straight from the pinned mask (runs once); exact divide.
        den = jnp.sum(mask2_ref[:, 0, :].astype(jnp.float32),
                      axis=-1, keepdims=True)              # (B, 1)
        pooled = masked_sum / jnp.maximum(den, 1.0)        # (B, D)

        # encoder projection + fused VAE head (single (L, 2L) matmul).
        latent = jnp.dot(pooled, w_enc_ref[...],
                         preferred_element_type=jnp.float32)        # (B, L)
        muvar = jnp.dot(latent, w_vae_ref[...],
                        preferred_element_type=jnp.float32)         # (B, 2L)
        mu = muvar[:, :lat]
        logvar = muvar[:, lat:]

        # reparameterize (nsamples = 1) with host-provided eps.
        z = mu + eps_ref[...].astype(jnp.float32) * jnp.exp(0.5 * logvar)

        # decoder projection; (B, D) output consumed by the broadcast kernel.
        dec = jnp.dot(z, w_dec_ref[...],
                      preferred_element_type=jnp.float32)           # (B, D)
        dec_ref[...] = dec

        # KL = 0.5 * sum(mu^2 + exp(logvar) - logvar - 1, dim=1); mean over B.
        kl = 0.5 * jnp.sum(mu * mu + jnp.exp(logvar) - logvar - 1.0,
                           axis=1, keepdims=True)                   # (B, 1)
        kl_ref[0, 0] = jnp.sum(kl) * (1.0 / bsz)

        # Closed-form MSE (no second read of x):
        #   sum_s ||x_s - dec||^2 = sum||x||^2 - 2*dec.(sum_s x_s) + S*||dec||^2
        sum_sq = jnp.sum(acc_sq[...])
        mse = (sum_sq
               - 2.0 * jnp.sum(dec * plain_sum)
               + float(total_seq) * jnp.sum(dec * dec)) * inv_n
        loss_ref[0, 0] = mse


# --------------------------------------------------------------------------- #
# Kernel B: pure broadcast-store of the reconstruction (parallel over tiles).
# --------------------------------------------------------------------------- #
def _broadcast_kernel(dec_ref, recon_ref):
    dec = dec_ref[...].astype(recon_ref.dtype)             # (B, D)
    recon_ref[...] = jnp.broadcast_to(dec[:, None, :], recon_ref.shape)


# --------------------------------------------------------------------------- #
# Generation-aware sizing.
# --------------------------------------------------------------------------- #
def _vmem_budgets():
    """(tile_budget_bytes, vmem_limit_bytes), derived from this chip's VMEM."""
    cap = 64 * 1024 * 1024                      # conservative fallback (v7x per-TC)
    try:
        info = pltpu.get_tpu_info()
        c = int(getattr(info, "vmem_capacity_bytes", 0) or 0)
        if c > 0:
            cap = c
    except Exception:                            # pragma: no cover - query best effort
        pass
    tile_budget = max(2 * 2**20, cap // 16)      # ~8 MiB on 128 MiB parts, ~4 MiB on v7x
    vmem_limit = min(int(cap * 0.70), 96 * 2**20)  # leave headroom for Mosaic scratch
    return tile_budget, vmem_limit


def _round_up(a, b):
    return ((a + b - 1) // b) * b


def _largest_fitting_tile(total, step, batch, hidden, itemsize, budget_bytes):
    """Largest multiple of `step` dividing `total` whose (batch, tile, hidden)
    block stays within `budget_bytes`; falls back to `step`."""
    best = min(step, total)
    t = step
    while t <= total:
        if total % t == 0 and batch * t * hidden * itemsize <= budget_bytes:
            best = t
        t += step
    return best


# --------------------------------------------------------------------------- #
# Wrapper.
# --------------------------------------------------------------------------- #
def _full_seq_vae_forward(x, mask, w_enc, w_vae, w_dec, eps, *,
                          seq_tile=None, materialize_recon=True):
    """Returns (recon_loss, reg_loss, recon_encoding, KL.mean()) like the
    PyTorch module's default forward path."""
    B, S, D = x.shape
    L = w_enc.shape[1]
    assert mask.shape == (B, S)
    assert w_vae.shape == (L, 2 * L) and w_dec.shape == (L, D)
    assert eps.shape == (B, L)

    itemsize = jnp.dtype(x.dtype).itemsize
    tile_budget, vmem_limit = _vmem_budgets()

    if seq_tile is None:
        s_pad = _round_up(S, 128)
        seq_tile = _largest_fitting_tile(s_pad, 128, B, D, itemsize, tile_budget)
    else:
        assert seq_tile % 128 == 0 or seq_tile == S, \
            "seq_tile must be a multiple of 128 (or the full sequence length)"
        s_pad = _round_up(S, seq_tile)

    # Zero-pad unaligned sequences; zeros are neutral for every accumulator and
    # the pooling/MSE use the original S.
    if s_pad != S:
        x = jnp.pad(x, ((0, 0), (0, s_pad - S), (0, 0)))
        mask = jnp.pad(mask, ((0, 0), (0, s_pad - S)))
    n_s = s_pad // seq_tile

    # Tiny (B, 2, S) [mask ; ones] operand built once in XLA; pinned in VMEM so
    # one MXU contraction per tile yields both masked and unmasked sums.
    mask2 = jnp.stack([mask, jnp.ones_like(mask)], axis=1).astype(x.dtype)

    kernel = functools.partial(_vae_reduce_kernel, seq_tile=seq_tile,
                               total_seq=S, inv_n=1.0 / float(B * S * D))

    pinned2 = lambda s: (0, 0)
    pinned3 = lambda s: (0, 0, 0)

    dec, loss, kl = pl.pallas_call(
        kernel,
        grid_spec=pltpu.PrefetchScalarGridSpec(
            num_scalar_prefetch=0,
            grid=(n_s,),
            in_specs=[
                pl.BlockSpec((B, seq_tile, D), lambda s: (0, s, 0)),   # x (streamed)
                pl.BlockSpec((B, 2, s_pad), pinned3),                  # [mask; ones], pinned
                pl.BlockSpec((D, L), pinned2),                         # encoder proj
                pl.BlockSpec((L, 2 * L), pinned2),                     # fused VAE head
                pl.BlockSpec((L, D), pinned2),                         # decoder proj
                pl.BlockSpec((B, L), pinned2),                         # eps noise
            ],
            out_specs=(
                pl.BlockSpec((B, D), pinned2),                          # dec (VMEM)
                pl.BlockSpec(memory_space=pltpu.MemorySpace.SMEM),      # recon_loss
                pl.BlockSpec(memory_space=pltpu.MemorySpace.SMEM),      # KL mean
            ),
            scratch_shapes=[
                pltpu.VMEM((B, 2, D), jnp.float32),    # masked / unmasked seq sums
                pltpu.VMEM((B, D), jnp.float32),       # sum(x^2) lane-resident partials
            ],
        ),
        out_shape=(
            jax.ShapeDtypeStruct((B, D), jnp.float32),
            jax.ShapeDtypeStruct((1, 1), jnp.float32),
            jax.ShapeDtypeStruct((1, 1), jnp.float32),
        ),
        compiler_params=pltpu.CompilerParams(
            dimension_semantics=("arbitrary",),        # sequence reduction
            vmem_limit_bytes=vmem_limit,
        ),
    )(x, mask2, w_enc, w_vae, w_dec, eps)

    recon_loss = loss[0, 0]
    kl_mean = kl[0, 0]
    reg_loss = jnp.float32(0.0)                        # reg_loss = 0 in the PyTorch code

    if materialize_recon:
        rec_tile = _largest_fitting_tile(s_pad, seq_tile, B, D, itemsize, tile_budget)
        recon = pl.pallas_call(
            _broadcast_kernel,
            grid_spec=pltpu.PrefetchScalarGridSpec(
                num_scalar_prefetch=0,
                grid=(s_pad // rec_tile,),
                in_specs=[pl.BlockSpec((B, D), pinned2)],
                out_specs=pl.BlockSpec((B, rec_tile, D), lambda s: (0, s, 0)),
            ),
            out_shape=jax.ShapeDtypeStruct((B, s_pad, D), x.dtype),
            compiler_params=pltpu.CompilerParams(
                dimension_semantics=("parallel",),     # lets v7x shard the store across TCs
                vmem_limit_bytes=vmem_limit,
            ),
        )(dec)
        if s_pad != S:
            recon = recon[:, :S, :]
    else:
        # recon is a pure broadcast; let XLA fuse it downstream (halves HBM traffic).
        recon = jnp.broadcast_to(dec[:, None, :], (B, S, D)).astype(x.dtype)

    return recon_loss, reg_loss, recon, kl_mean


full_seq_vae_forward = jax.jit(_full_seq_vae_forward,
                               static_argnames=("seq_tile", "materialize_recon"))


# --------------------------------------------------------------------------- #
# Pure-JAX reference (verification only).
# --------------------------------------------------------------------------- #
def _reference_forward(x, mask, w_enc, w_vae, w_dec, eps):
    xf = x.astype(jnp.float32)
    m = mask.astype(jnp.float32)
    L = w_enc.shape[1]
    denom = jnp.maximum(jnp.sum(m, axis=1, keepdims=True), 1.0)
    pooled = jnp.sum(xf * m[:, :, None], axis=1) / denom
    latent = pooled @ w_enc
    muvar = latent @ w_vae
    mu, logvar = muvar[:, :L], muvar[:, L:]
    z = mu + eps * jnp.exp(0.5 * logvar)
    kl = 0.5 * jnp.sum(mu ** 2 + jnp.exp(logvar) - logvar - 1.0, axis=1)
    dec = z @ w_dec
    recon = jnp.broadcast_to(dec[:, None, :], xf.shape)
    mse = jnp.mean((xf - recon) ** 2)
    return mse, recon, jnp.mean(kl)


if __name__ == "__main__":
    # Small, alignment-friendly shapes consistent with the module's forward.
    B, S, D = 2, 256, 256        # batch, seq, hidden
    L = 128                      # model_args.ae_latent_size

    key = jax.random.PRNGKey(0)
    k_x, k_we, k_wv, k_wd, k_eps = jax.random.split(key, 5)

    x = jax.random.normal(k_x, (B, S, D), dtype=jnp.float32)
    lengths = jnp.array([[S], [S - 64]])
    mask = (jnp.arange(S)[None, :] < lengths).astype(jnp.float32)

    # Encoder / decoder projections (realizing the abstract submodules).
    w_enc = 0.1 * jax.random.normal(k_we, (D, L), dtype=jnp.float32)
    # nn.Linear(L, 2L, bias=False): weight (2L, L); y = x @ W.T  ->  (L, 2L).
    w_vae = jnp.transpose(0.1 * jax.random.normal(k_wv, (2 * L, L),
                                                  dtype=jnp.float32))
    w_dec = 0.1 * jax.random.normal(k_wd, (L, D), dtype=jnp.float32)

    # Deterministic reparameterization noise (replaces torch .normal_()).
    eps = jax.random.normal(k_eps, (B, L), dtype=jnp.float32)

    # Explicit small tile: exercises the multi-tile streaming accumulation.
    recon_loss, reg_loss, recon, kl_mean = full_seq_vae_forward(
        x, mask, w_enc, w_vae, w_dec, eps, seq_tile=128)
    jax.block_until_ready((recon_loss, reg_loss, recon, kl_mean))

    # Auto (generation-aware) tiling path.
    recon_loss2, _, recon2, kl_mean2 = full_seq_vae_forward(
        x, mask, w_enc, w_vae, w_dec, eps)
    jax.block_until_ready((recon_loss2, recon2, kl_mean2))

    # Verify against the pure-JAX reference.
    ref_mse, ref_recon, ref_kl = _reference_forward(
        x, mask, w_enc, w_vae, w_dec, eps)
    assert recon.shape == (B, S, D)
    assert recon_loss.shape == () and kl_mean.shape == ()
    assert bool(jnp.isfinite(recon_loss)) and bool(jnp.isfinite(kl_mean))
    assert bool(jnp.all(jnp.isfinite(recon)))
    assert bool(jnp.allclose(recon_loss, ref_mse, rtol=2e-2, atol=2e-3))
    assert bool(jnp.allclose(kl_mean, ref_kl, rtol=2e-2, atol=2e-3))
    assert bool(jnp.allclose(recon, ref_recon.astype(recon.dtype),
                             rtol=2e-2, atol=5e-3))
    # Tiling must not change the math.
    assert bool(jnp.allclose(recon_loss2, recon_loss, rtol=1e-3, atol=1e-4))
    assert bool(jnp.allclose(kl_mean2, kl_mean, rtol=1e-3, atol=1e-4))
    assert bool(jnp.allclose(recon2, recon, rtol=1e-3, atol=1e-4))
    print("KERNEL_OK")
</pallas_src>

<mosaic_0001>
module attributes {stable_mosaic.version = 11 : i64} {
  func.func @_vae_reduce_kernel(%arg0: i32, %arg1: memref<2x128x256xf32, #tpu.memory_space<vmem>>, %arg2: memref<2x2x256xf32, #tpu.memory_space<vmem>>, %arg3: memref<256x128xf32, #tpu.memory_space<vmem>>, %arg4: memref<128x256xf32, #tpu.memory_space<vmem>>, %arg5: memref<128x256xf32, #tpu.memory_space<vmem>>, %arg6: memref<2x128xf32, #tpu.memory_space<vmem>>, %arg7: memref<2x256xf32, #tpu.memory_space<vmem>>, %arg8: memref<1x1xf32, #tpu.memory_space<smem>>, %arg9: memref<1x1xf32, #tpu.memory_space<smem>>, %arg10: memref<2x2x256xf32, #tpu.memory_space<vmem>>, %arg11: memref<2x256xf32, #tpu.memory_space<vmem>>) attributes {dimension_semantics = [#tpu.dimension_semantics<arbitrary>], iteration_bounds = array<i64: 2>, scalar_prefetch = 0 : i64, scratch_operands = 2 : i64, tpu.core_type = #tpu.core_type<tc>, window_params = [{transform_indices = @transform_0, window_bounds = array<i64: 2, 128, 256>}, {pipeline_mode = #tpu.pipeline_mode<synchronous>, transform_indices = @transform_1, window_bounds = array<i64: 2, 2, 256>}, {pipeline_mode = #tpu.pipeline_mode<synchronous>, transform_indices = @transform_2, window_bounds = array<i64: 256, 128>}, {pipeline_mode = #tpu.pipeline_mode<synchronous>, transform_indices = @transform_3, window_bounds = array<i64: 128, 256>}, {pipeline_mode = #tpu.pipeline_mode<synchronous>, transform_indices = @transform_4, window_bounds = array<i64: 128, 256>}, {pipeline_mode = #tpu.pipeline_mode<synchronous>, transform_indices = @transform_5, window_bounds = array<i64: 2, 128>}, {pipeline_mode = #tpu.pipeline_mode<synchronous>, transform_indices = @transform_6, window_bounds = array<i64: 2, 256>}, {transform_indices = @transform_7, window_bounds = array<i64: 1, 1>}, {transform_indices = @transform_8, window_bounds = array<i64: 1, 1>}]} {
    %c0_i32 = arith.constant 0 : i32
    %0 = arith.cmpi eq, %arg0, %c0_i32 : i32
    %1 = arith.extui %0 : i1 to i32
    %c0_i32_0 = arith.constant 0 : i32
    %2 = arith.cmpi ne, %1, %c0_i32_0 : i32
    scf.if %2 {
      %cst_17 = arith.constant 0.000000e+00 : f32
      %20 = vector.broadcast %cst_17 : f32 to vector<2x2x256xf32>
      %c0_18 = arith.constant 0 : index
      %c0_19 = arith.constant 0 : index
      %c0_20 = arith.constant 0 : index
      %21 = vector.load %arg10[%c0_18, %c0_19, %c0_20] : memref<2x2x256xf32, #tpu.memory_space<vmem>>, vector<2x2x256xf32>
      tpu.vector_store %arg10[%c0_18, %c0_19, %c0_20], %20 {strides = array<i32>} : memref<2x2x256xf32, #tpu.memory_space<vmem>>, vector<2x2x256xf32>,
      %cst_21 = arith.constant 0.000000e+00 : f32
      %22 = vector.broadcast %cst_21 : f32 to vector<2x256xf32>
      %c0_22 = arith.constant 0 : index
      %c0_23 = arith.constant 0 : index
      %23 = vector.load %arg11[%c0_22, %c0_23] : memref<2x256xf32, #tpu.memory_space<vmem>>, vector<2x256xf32>
      tpu.vector_store %arg11[%c0_22, %c0_23], %22 {strides = array<i32>} : memref<2x256xf32, #tpu.memory_space<vmem>>, vector<2x256xf32>,
    } else {
    }
    %c0 = arith.constant 0 : index
    %c0_1 = arith.constant 0 : index
    %c0_2 = arith.constant 0 : index
    %3 = vector.load %arg1[%c0, %c0_1, %c0_2] : memref<2x128x256xf32, #tpu.memory_space<vmem>>, vector<2x128x256xf32>
    %c128_i32 = arith.constant 128 : i32
    %4 = arith.muli %arg0, %c128_i32 : i32
    %5 = tpu.assume_multiple %4, 128 : i32
    %c0_3 = arith.constant 0 : index
    %c0_4 = arith.constant 0 : index
    %6 = arith.index_cast %5 : i32 to index
    %7 = vector.load %arg2[%c0_3, %c0_4, %6] : memref<2x2x256xf32, #tpu.memory_space<vmem>>, vector<2x2x128xf32>
    "tpu.trace_start"() <{level = 10 : i32, message = "bts,bsd->btd"}> : () -> ()
    %cst = arith.constant dense<0.000000e+00> : vector<2x2x256xf32>
    %8 = tpu.matmul %7, %3, %cst {dimension_numbers = #tpu.dot_dimension_numbers<[2], [1], [1], [2], [0, 0, 0, 1, 1, 2], [0], [0]>} : vector<2x2x128xf32>, vector<2x128x256xf32>, vector<2x2x256xf32> -> vector<2x2x256xf32>
    "tpu.trace_stop"() : () -> ()
    %c0_5 = arith.constant 0 : index
    %c0_6 = arith.constant 0 : index
    %c0_7 = arith.constant 0 : index
    %9 = vector.load %arg10[%c0_5, %c0_6, %c0_7] : memref<2x2x256xf32, #tpu.memory_space<vmem>>, vector<2x2x256xf32>
    %10 = arith.addf %9, %8 : vector<2x2x256xf32>
    %c0_8 = arith.constant 0 : index
    %c0_9 = arith.constant 0 : index
    %c0_10 = arith.constant 0 : index
    %11 = vector.load %arg10[%c0_8, %c0_9, %c0_10] : memref<2x2x256xf32, #tpu.memory_space<vmem>>, vector<2x2x256xf32>
    tpu.vector_store %arg10[%c0_8, %c0_9, %c0_10], %10 {strides = array<i32>} : memref<2x2x256xf32, #tpu.memory_space<vmem>>, vector<2x2x256xf32>,
    %c0_11 = arith.constant 0 : index
    %c0_12 = arith.constant 0 : index
    %12 = vector.load %arg11[%c0_11, %c0_12] : memref<2x256xf32, #tpu.memory_space<vmem>>, vector<2x256xf32>
    %13 = arith.mulf %3, %3 : vector<2x128x256xf32>
    %cst_13 = arith.constant dense<0.000000e+00> : vector<2x256xf32>
    %14 = vector.multi_reduction <add>, %13, %cst_13 [1] : vector<2x128x256xf32> to vector<2x256xf32>
    %15 = arith.addf %12, %14 : vector<2x256xf32>
    %c0_14 = arith.constant 0 : index
    %c0_15 = arith.constant 0 : index
    %16 = vector.load %arg11[%c0_14, %c0_15] : memref<2x256xf32, #tpu.memory_space<vmem>>, vector<2x256xf32>
    tpu.vector_store %arg11[%c0_14, %c0_15], %15 {strides = array<i32>} : memref<2x256xf32, #tpu.memory_space<vmem>>, vector<2x256xf32>,
    %c1_i32 = arith.constant 1 : i32
    %17 = arith.cmpi eq, %arg0, %c1_i32 : i32
    %18 = arith.extui %17 : i1 to i32
    %c0_i32_16 = arith.constant 0 : i32
    %19 = arith.cmpi ne, %18, %c0_i32_16 : i32
    scf.if %19 {
      %c0_17 = arith.constant 0 : index
      %c0_18 = arith.constant 0 : index
      %c0_19 = arith.constant 0 : index
      %20 = vector.load %arg10[%c0_17, %c0_18, %c0_19] : memref<2x2x256xf32, #tpu.memory_space<vmem>>, vector<2x2x256xf32>
      %21 = vector.extract_strided_slice %20 {offsets = [0, 0, 0], sizes = [2, 1, 256], strides = [1, 1, 1]} : vector<2x2x256xf32> to vector<2x1x256xf32>
      %22 = vector.shape_cast %21 : vector<2x1x256xf32> to vector<2x256xf32>
      %23 = vector.extract_strided_slice %20 {offsets = [0, 1, 0], sizes = [2, 1, 256], strides = [1, 1, 1]} : vector<2x2x256xf32> to vector<2x1x256xf32>
      %24 = vector.shape_cast %23 : vector<2x1x256xf32> to vector<2x256xf32>
      %c0_20 = arith.constant 0 : index
      %c0_21 = arith.constant 0 : index
      %c0_22 = arith.constant 0 : index
      %25 = vector.load %arg2[%c0_20, %c0_21, %c0_22] : memref<2x2x256xf32, #tpu.memory_space<vmem>>, vector<2x1x256xf32>
      %26 = vector.shape_cast %25 : vector<2x1x256xf32> to vector<2x256xf32>
      %cst_23 = arith.constant dense<0.000000e+00> : vector<2xf32>
      %27 = vector.multi_reduction <add>, %26, %cst_23 [1] : vector<2x256xf32> to vector<2xf32>
      %28 = vector.shape_cast %27 : vector<2xf32> to vector<2x1xf32>
      %cst_24 = arith.constant 1.000000e+00 : f32
      %29 = vector.broadcast %cst_24 : f32 to vector<2x1xf32>
      %30 = arith.maximumf %28, %29 : vector<2x1xf32>
      %31 = vector.broadcast %30 : vector<2x1xf32> to vector<2x256xf32>
      %32 = arith.divf %22, %31 : vector<2x256xf32>
      %c0_25 = arith.constant 0 : index
      %c0_26 = arith.constant 0 : index
      %33 = vector.load %arg3[%c0_25, %c0_26] : memref<256x128xf32, #tpu.memory_space<vmem>>, vector<256x128xf32>
      %cst_27 = arith.constant dense<0.000000e+00> : vector<2x128xf32>
      %34 = tpu.matmul %32, %33, %cst_27 {dimension_numbers = #tpu.dot_dimension_numbers<[1], [0], [0], [1], [0, 0, 1, 1], [], []>} : vector<2x256xf32>, vector<256x128xf32>, vector<2x128xf32> -> vector<2x128xf32>
      %c0_28 = arith.constant 0 : index
      %c0_29 = arith.constant 0 : index
      %35 = vector.load %arg4[%c0_28, %c0_29] : memref<128x256xf32, #tpu.memory_space<vmem>>, vector<128x256xf32>
      %cst_30 = arith.constant dense<0.000000e+00> : vector<2x256xf32>
      %36 = tpu.matmul %34, %35, %cst_30 {dimension_numbers = #tpu.dot_dimension_numbers<[1], [0], [0], [1], [0, 0, 1, 1], [], []>} : vector<2x128xf32>, vector<128x256xf32>, vector<2x256xf32> -> vector<2x256xf32>
      %37 = vector.extract_strided_slice %36 {offsets = [0, 0], sizes = [2, 128], strides = [1, 1]} : vector<2x256xf32> to vector<2x128xf32>
      %38 = vector.extract_strided_slice %36 {offsets = [0, 128], sizes = [2, 128], strides = [1, 1]} : vector<2x256xf32> to vector<2x128xf32>
      %c0_31 = arith.constant 0 : index
      %c0_32 = arith.constant 0 : index
      %39 = vector.load %arg6[%c0_31, %c0_32] : memref<2x128xf32, #tpu.memory_space<vmem>>, vector<2x128xf32>
      %cst_33 = arith.constant 5.000000e-01 : f32
      %40 = vector.broadcast %cst_33 : f32 to vector<2x128xf32>
      %41 = arith.mulf %40, %38 : vector<2x128xf32>
      %42 = math.exp %41 : vector<2x128xf32>
      %43 = arith.mulf %39, %42 : vector<2x128xf32>
      %44 = arith.addf %37, %43 : vector<2x128xf32>
      %c0_34 = arith.constant 0 : index
      %c0_35 = arith.constant 0 : index
      %45 = vector.load %arg5[%c0_34, %c0_35] : memref<128x256xf32, #tpu.memory_space<vmem>>, vector<128x256xf32>
      %cst_36 = arith.constant dense<0.000000e+00> : vector<2x256xf32>
      %46 = tpu.matmul %44, %45, %cst_36 {dimension_numbers = #tpu.dot_dimension_numbers<[1], [0], [0], [1], [0, 0, 1, 1], [], []>} : vector<2x128xf32>, vector<128x256xf32>, vector<2x256xf32> -> vector<2x256xf32>
      %c0_37 = arith.constant 0 : index
      %c0_38 = arith.constant 0 : index
      %47 = vector.load %arg7[%c0_37, %c0_38] : memref<2x256xf32, #tpu.memory_space<vmem>>, vector<2x256xf32>
      tpu.vector_store %arg7[%c0_37, %c0_38], %46 {strides = array<i32>} : memref<2x256xf32, #tpu.memory_space<vmem>>, vector<2x256xf32>,
      %48 = arith.mulf %37, %37 : vector<2x128xf32>
      %49 = math.exp %38 : vector<2x128xf32>
      %50 = arith.addf %48, %49 : vector<2x128xf32>
      %51 = arith.subf %50, %38 : vector<2x128xf32>
      %cst_39 = arith.constant 1.000000e+00 : f32
      %52 = vector.broadcast %cst_39 : f32 to vector<2x128xf32>
      %53 = arith.subf %51, %52 : vector<2x128xf32>
      %cst_40 = arith.constant dense<0.000000e+00> : vector<2xf32>
      %54 = vector.multi_reduction <add>, %53, %cst_40 [1] : vector<2x128xf32> to vector<2xf32>
      %55 = vector.shape_cast %54 : vector<2xf32> to vector<2x1xf32>
      %cst_41 = arith.constant 5.000000e-01 : f32
      %56 = vector.broadcast %cst_41 : f32 to vector<2x1xf32>
      %57 = arith.mulf %56, %55 : vector<2x1xf32>
      %58 = vector.shape_cast %57 : vector<2x1xf32> to vector<1x2x1xf32>
      %cst_42 = arith.constant dense<0.000000e+00> : vector<1xf32>
      %59 = vector.multi_reduction <add>, %58, %cst_42 [1, 2] : vector<1x2x1xf32> to vector<1xf32>
      %60 = vector.shape_cast %59 : vector<1xf32> to vector<1x1x1xf32>
      %61 = vector.extract %60[0, 0, 0] : f32 from vector<1x1x1xf32>
      %cst_43 = arith.constant 5.000000e-01 : f32
      %62 = arith.mulf %61, %cst_43 : f32
      %c0_44 = arith.constant 0 : index
      %c0_45 = arith.constant 0 : index
      %63 = memref.load %arg9[%c0_44, %c0_45] : memref<1x1xf32, #tpu.memory_space<smem>>
      memref.store %62, %arg9[%c0_44, %c0_45] : memref<1x1xf32, #tpu.memory_space<smem>>
      %c0_46 = arith.constant 0 : index
      %c0_47 = arith.constant 0 : index
      %64 = vector.load %arg11[%c0_46, %c0_47] : memref<2x256xf32, #tpu.memory_space<vmem>>, vector<2x256xf32>
      %65 = vector.shape_cast %64 : vector<2x256xf32> to vector<1x2x256xf32>
      %cst_48 = arith.constant dense<0.000000e+00> : vector<1xf32>
      %66 = vector.multi_reduction <add>, %65, %cst_48 [1, 2] : vector<1x2x256xf32> to vector<1xf32>
      %67 = vector.shape_cast %66 : vector<1xf32> to vector<1x1x1xf32>
      %68 = vector.extract %67[0, 0, 0] : f32 from vector<1x1x1xf32>
      %69 = arith.mulf %46, %24 : vector<2x256xf32>
      %70 = vector.shape_cast %69 : vector<2x256xf32> to vector<1x2x256xf32>
      %cst_49 = arith.constant dense<0.000000e+00> : vector<1xf32>
      %71 = vector.multi_reduction <add>, %70, %cst_49 [1, 2] : vector<1x2x256xf32> to vector<1xf32>
      %72 = vector.shape_cast %71 : vector<1xf32> to vector<1x1x1xf32>
      %73 = vector.extract %72[0, 0, 0] : f32 from vector<1x1x1xf32>
      %cst_50 = arith.constant 2.000000e+00 : f32
      %74 = arith.mulf %cst_50, %73 : f32
      %75 = arith.subf %68, %74 : f32
      %76 = arith.mulf %46, %46 : vector<2x256xf32>
      %77 = vector.shape_cast %76 : vector<2x256xf32> to vector<1x2x256xf32>
      %cst_51 = arith.constant dense<0.000000e+00> : vector<1xf32>
      %78 = vector.multi_reduction <add>, %77, %cst_51 [1, 2] : vector<1x2x256xf32> to vector<1xf32>
      %79 = vector.shape_cast %78 : vector<1xf32> to vector<1x1x1xf32>
      %80 = vector.extract %79[0, 0, 0] : f32 from vector<1x1x1xf32>
      %cst_52 = arith.constant 2.560000e+02 : f32
      %81 = arith.mulf %cst_52, %80 : f32
      %82 = arith.addf %75, %81 : f32
      %cst_53 = arith.constant 7.62939453E-6 : f32
      %83 = arith.mulf %82, %cst_53 : f32
      %c0_54 = arith.constant 0 : index
      %c0_55 = arith.constant 0 : index
      %84 = memref.load %arg8[%c0_54, %c0_55] : memref<1x1xf32, #tpu.memory_space<smem>>
      memref.store %83, %arg8[%c0_54, %c0_55] : memref<1x1xf32, #tpu.memory_space<smem>>
    } else {
    }
    return
  }
  func.func @transform_0(%arg0: i32) -> (i32, i32, i32) {
    %c0_i32 = arith.constant 0 : i32
    %c0_i32_0 = arith.constant 0 : i32
    %c0_i32_1 = arith.constant 0 : i32
    return %c0_i32, %arg0, %c0_i32_0 : i32, i32, i32
  }
  func.func @transform_1(%arg0: i32) -> (i32, i32, i32) {
    %c0_i32 = arith.constant 0 : i32
    %c0_i32_0 = arith.constant 0 : i32
    %c0_i32_1 = arith.constant 0 : i32
    %c0_i32_2 = arith.constant 0 : i32
    return %c0_i32, %c0_i32_0, %c0_i32_1 : i32, i32, i32
  }
  func.func @transform_2(%arg0: i32) -> (i32, i32) {
    %c0_i32 = arith.constant 0 : i32
    %c0_i32_0 = arith.constant 0 : i32
    %c0_i32_1 = arith.constant 0 : i32
    return %c0_i32, %c0_i32_0 : i32, i32
  }
  func.func @transform_3(%arg0: i32) -> (i32, i32) {
    %c0_i32 = arith.constant 0 : i32
    %c0_i32_0 = arith.constant 0 : i32
    %c0_i32_1 = arith.constant 0 : i32
    return %c0_i32, %c0_i32_0 : i32, i32
  }
  func.func @transform_4(%arg0: i32) -> (i32, i32) {
    %c0_i32 = arith.constant 0 : i32
    %c0_i32_0 = arith.constant 0 : i32
    %c0_i32_1 = arith.constant 0 : i32
    return %c0_i32, %c0_i32_0 : i32, i32
  }
  func.func @transform_5(%arg0: i32) -> (i32, i32) {
    %c0_i32 = arith.constant 0 : i32
    %c0_i32_0 = arith.constant 0 : i32
    %c0_i32_1 = arith.constant 0 : i32
    return %c0_i32, %c0_i32_0 : i32, i32
  }
  func.func @transform_6(%arg0: i32) -> (i32, i32) {
    %c0_i32 = arith.constant 0 : i32
    %c0_i32_0 = arith.constant 0 : i32
    %c0_i32_1 = arith.constant 0 : i32
    return %c0_i32, %c0_i32_0 : i32, i32
  }
  func.func @transform_7(%arg0: i32) -> (i32, i32) {
    %c0_i32 = arith.constant 0 : i32
    %c0_i32_0 = arith.constant 0 : i32
    %c0_i32_1 = arith.constant 0 : i32
    return %c0_i32, %c0_i32_0 : i32, i32
  }
  func.func @transform_8(%arg0: i32) -> (i32, i32) {
    %c0_i32 = arith.constant 0 : i32
    %c0_i32_0 = arith.constant 0 : i32
    %c0_i32_1 = arith.constant 0 : i32
    return %c0_i32, %c0_i32_0 : i32, i32
  }
}

module attributes {stable_mosaic.version = 11 : i64} {
  func.func @_broadcast_kernel(%arg0: i32, %arg1: memref<2x256xf32, #tpu.memory_space<vmem>>, %arg2: memref<2x256x256xf32, #tpu.memory_space<vmem>>) attributes {dimension_semantics = [#tpu.dimension_semantics<parallel>], iteration_bounds = array<i64: 1>, scalar_prefetch = 0 : i64, scratch_operands = 0 : i64, tpu.core_type = #tpu.core_type<tc>, window_params = [{pipeline_mode = #tpu.pipeline_mode<synchronous>, transform_indices = @transform_0, window_bounds = array<i64: 2, 256>}, {transform_indices = @transform_1, window_bounds = array<i64: 2, 256, 256>}]} {
    %c0 = arith.constant 0 : index
    %c0_0 = arith.constant 0 : index
    %0 = vector.load %arg1[%c0, %c0_0] : memref<2x256xf32, #tpu.memory_space<vmem>>, vector<2x256xf32>
    %1 = vector.shape_cast %0 : vector<2x256xf32> to vector<2x1x256xf32>
    %2 = vector.shape_cast %1 : vector<2x1x256xf32> to vector<2x1x256xf32>
    %3 = vector.broadcast %2 : vector<2x1x256xf32> to vector<2x256x256xf32>
    %c0_1 = arith.constant 0 : index
    %c0_2 = arith.constant 0 : index
    %c0_3 = arith.constant 0 : index
    %4 = vector.load %arg2[%c0_1, %c0_2, %c0_3] : memref<2x256x256xf32, #tpu.memory_space<vmem>>, vector<2x256x256xf32>
    tpu.vector_store %arg2[%c0_1, %c0_2, %c0_3], %3 {strides = array<i32>} : memref<2x256x256xf32, #tpu.memory_space<vmem>>, vector<2x256x256xf32>,
    return
  }
  func.func @transform_0(%arg0: i32) -> (i32, i32) {
    %c0_i32 = arith.constant 0 : i32
    %c0_i32_0 = arith.constant 0 : i32
    %c0_i32_1 = arith.constant 0 : i32
    return %c0_i32, %c0_i32_0 : i32, i32
  }
  func.func @transform_1(%arg0: i32) -> (i32, i32, i32) {
    %c0_i32 = arith.constant 0 : i32
    %c0_i32_0 = arith.constant 0 : i32
    %c0_i32_1 = arith.constant 0 : i32
    return %c0_i32, %arg0, %c0_i32_0 : i32, i32, i32
  }
}

</mosaic_0001>

<bundles_post_ra>
// kernel: _full_seq_vae_forward.3
= control target key start
LH: loop header
LB: loop body
LE: loop exit
PB: predicated region body
PF: predicated region fallthrough
CT: control target
= control target key end

     0   :  { %v19_v1 = vlaneseq  ;;  %s348_s0 = inlined_call_operand.vmem [shape: f32[2,256], index: 0, kind: input, shape index: {}]   ;;  %s349_s1 = inlined_call_operand.hbm [shape: f32[2,256,256], index: 1, kind: output, shape index: {}]  }
   0x1   :  { %v183_v0 = vld.sshfl [vmem:[%s348_s0] sm:$0x33 pattern:$0x75316420] }
   0x2   :  { %6 = vsyncpa [#allocation3], 0  ;;  %v20_v2 = vshrl.u32 %v19_v1, 7  ;;  %v18_v3 = vcombine.high %v183_v0, %v183_v0  ;;  %s211_s8 = smov [#allocation2]  }
   0x3   :  { %s172_s9 = sshll.u32 %s211_s8, 4  ;;  %s233_s9 = int_to_ptr.vmem [resolvable:$true] %s172_s9 }
   0x4   :  { %v21_v4 = vsub.s32 0, %v20_v2  ;;  %v25_v5 = vsub.s32 1, %v20_v2  ;;  %s187_s0 = scalar_lea.vmem %s233_s9, 16384  ;;  %p192_p1 = scmp.lt.s32.totalorder %s233_s9, %s233_s9 }
   0x5   :  { %p188_p0 = scmp.ne.s32.totalorder %s233_s9, %s187_s0  ;;  %p193_p2 = scmp.lt.s32.totalorder %s187_s0, %s187_s0 }
   0x6   :  { %v22_v6 = vrot.slane %v183_v0, %v21_v4  ;;  %v227_v7 = vrot.slane %v183_v0, %v25_v5  ;;  %v229_v8 = vrot.slane %v18_v3, %v21_v4  ;;  %v231_v9 = vrot.slane %v18_v3, %v25_v5 }
   0x7   :  { %p194_p3 = por %p193_p2, %p192_p1 }
   0x8   :  { %39 = vst [vmem:[#allocation2] sm:$0xff] %v22_v6  ;;  %41 = vst [vmem:[#allocation2 + $0x10] sm:$0xff] %v22_v6 }
   0x9   :  { %43 = vst [vmem:[#allocation2 + $0x20] sm:$0xff] %v22_v6  ;;  %45 = vst [vmem:[#allocation2 + $0x30] sm:$0xff] %v22_v6  ;;  %p195_p4 = pnand %p194_p3, %p188_p0 }
   0xa   :  { %47 = vst [vmem:[#allocation2 + $0x40] sm:$0xff] %v22_v6  ;;  %49 = vst [vmem:[#allocation2 + $0x50] sm:$0xff] %v22_v6 }
   0xb   :  { %51 = vst [vmem:[#allocation2 + $0x60] sm:$0xff] %v22_v6  ;;  %53 = vst [vmem:[#allocation2 + $0x70] sm:$0xff] %v22_v6 }
   0xc   :  { %55 = vst [vmem:[#allocation2 + $0x80] sm:$0xff] %v22_v6  ;;  %57 = vst [vmem:[#allocation2 + $0x90] sm:$0xff] %v22_v6 }
   0xd   :  { %59 = vst [vmem:[#allocation2 + $0xa0] sm:$0xff] %v22_v6  ;;  %61 = vst [vmem:[#allocation2 + $0xb0] sm:$0xff] %v22_v6 }
   0xe   :  { %63 = vst [vmem:[#allocation2 + $0xc0] sm:$0xff] %v22_v6  ;;  %65 = vst [vmem:[#allocation2 + $0xd0] sm:$0xff] %v22_v6 }
   0xf   :  { %67 = vst [vmem:[#allocation2 + $0xe0] sm:$0xff] %v22_v6  ;;  %69 = vst [vmem:[#allocation2 + $0xf0] sm:$0xff] %v22_v6 }
  0x10   :  { %71 = vst [vmem:[#allocation2 + $0x100] sm:$0xff] %v22_v6  ;;  %73 = vst [vmem:[#allocation2 + $0x110] sm:$0xff] %v22_v6 }
  0x11   :  { %75 = vst [vmem:[#allocation2 + $0x120] sm:$0xff] %v22_v6  ;;  %77 = vst [vmem:[#allocation2 + $0x130] sm:$0xff] %v22_v6 }
  0x12   :  { %79 = vst [vmem:[#allocation2 + $0x140] sm:$0xff] %v22_v6  ;;  %81 = vst [vmem:[#allocation2 + $0x150] sm:$0xff] %v22_v6 }
  0x13   :  { %83 = vst [vmem:[#allocation2 + $0x160] sm:$0xff] %v22_v6  ;;  %85 = vst [vmem:[#allocation2 + $0x170] sm:$0xff] %v22_v6 }
  0x14   :  { %87 = vst [vmem:[#allocation2 + $0x180] sm:$0xff] %v22_v6  ;;  %89 = vst [vmem:[#allocation2 + $0x190] sm:$0xff] %v22_v6 }
  0x15   :  { %91 = vst [vmem:[#allocation2 + $0x1a0] sm:$0xff] %v22_v6  ;;  %93 = vst [vmem:[#allocation2 + $0x1b0] sm:$0xff] %v22_v6 }
  0x16   :  { %95 = vst [vmem:[#allocation2 + $0x1c0] sm:$0xff] %v22_v6  ;;  %97 = vst [vmem:[#allocation2 + $0x1d0] sm:$0xff] %v22_v6 }
  0x17   :  { %99 = vst [vmem:[#allocation2 + $0x1e0] sm:$0xff] %v22_v6  ;;  %101 = vst [vmem:[#allocation2 + $0x1f0] sm:$0xff] %v22_v6 }
  0x18   :  { %40 = vst [vmem:[#allocation2 + $0x8] sm:$0xff] %v227_v7  ;;  %42 = vst [vmem:[#allocation2 + $0x18] sm:$0xff] %v227_v7 }
  0x19   :  { %44 = vst [vmem:[#allocation2 + $0x28] sm:$0xff] %v227_v7  ;;  %46 = vst [vmem:[#allocation2 + $0x38] sm:$0xff] %v227_v7 }
  0x1a   :  { %48 = vst [vmem:[#allocation2 + $0x48] sm:$0xff] %v227_v7  ;;  %50 = vst [vmem:[#allocation2 + $0x58] sm:$0xff] %v227_v7 }
  0x1b   :  { %52 = vst [vmem:[#allocation2 + $0x68] sm:$0xff] %v227_v7  ;;  %54 = vst [vmem:[#allocation2 + $0x78] sm:$0xff] %v227_v7 }
  0x1c   :  { %56 = vst [vmem:[#allocation2 + $0x88] sm:$0xff] %v227_v7  ;;  %58 = vst [vmem:[#allocation2 + $0x98] sm:$0xff] %v227_v7 }
  0x1d   :  { %60 = vst [vmem:[#allocation2 + $0xa8] sm:$0xff] %v227_v7  ;;  %62 = vst [vmem:[#allocation2 + $0xb8] sm:$0xff] %v227_v7 }
  0x1e   :  { %64 = vst [vmem:[#allocation2 + $0xc8] sm:$0xff] %v227_v7  ;;  %66 = vst [vmem:[#allocation2 + $0xd8] sm:$0xff] %v227_v7 }
  0x1f   :  { %68 = vst [vmem:[#allocation2 + $0xe8] sm:$0xff] %v227_v7  ;;  %70 = vst [vmem:[#allocation2 + $0xf8] sm:$0xff] %v227_v7 }
  0x20   :  { %72 = vst [vmem:[#allocation2 + $0x108] sm:$0xff] %v227_v7  ;;  %74 = vst [vmem:[#allocation2 + $0x118] sm:$0xff] %v227_v7 }
  0x21   :  { %76 = vst [vmem:[#allocation2 + $0x128] sm:$0xff] %v227_v7  ;;  %78 = vst [vmem:[#allocation2 + $0x138] sm:$0xff] %v227_v7 }
  0x22   :  { %80 = vst [vmem:[#allocation2 + $0x148] sm:$0xff] %v227_v7  ;;  %82 = vst [vmem:[#allocation2 + $0x158] sm:$0xff] %v227_v7 }
  0x23   :  { %84 = vst [vmem:[#allocation2 + $0x168] sm:$0xff] %v227_v7  ;;  %86 = vst [vmem:[#allocation2 + $0x178] sm:$0xff] %v227_v7 }
  0x24   :  { %88 = vst [vmem:[#allocation2 + $0x188] sm:$0xff] %v227_v7  ;;  %90 = vst [vmem:[#allocation2 + $0x198] sm:$0xff] %v227_v7 }
  0x25   :  { %92 = vst [vmem:[#allocation2 + $0x1a8] sm:$0xff] %v227_v7  ;;  %94 = vst [vmem:[#allocation2 + $0x1b8] sm:$0xff] %v227_v7 }
  0x26   :  { %96 = vst [vmem:[#allocation2 + $0x1c8] sm:$0xff] %v227_v7  ;;  %98 = vst [vmem:[#allocation2 + $0x1d8] sm:$0xff] %v227_v7 }
  0x27   :  { %100 = vst [vmem:[#allocation2 + $0x1e8] sm:$0xff] %v227_v7  ;;  %102 = vst [vmem:[#allocation2 + $0x1f8] sm:$0xff] %v227_v7 }
  0x28   :  { %103 = vst [vmem:[#allocation2 + $0x200] sm:$0xff] %v229_v8  ;;  %105 = vst [vmem:[#allocation2 + $0x210] sm:$0xff] %v229_v8 }
  0x29   :  { %107 = vst [vmem:[#allocation2 + $0x220] sm:$0xff] %v229_v8  ;;  %109 = vst [vmem:[#allocation2 + $0x230] sm:$0xff] %v229_v8 }
  0x2a   :  { %111 = vst [vmem:[#allocation2 + $0x240] sm:$0xff] %v229_v8  ;;  %113 = vst [vmem:[#allocation2 + $0x250] sm:$0xff] %v229_v8 }
  0x2b   :  { %115 = vst [vmem:[#allocation2 + $0x260] sm:$0xff] %v229_v8  ;;  %117 = vst [vmem:[#allocation2 + $0x270] sm:$0xff] %v229_v8 }
  0x2c   :  { %119 = vst [vmem:[#allocation2 + $0x280] sm:$0xff] %v229_v8  ;;  %121 = vst [vmem:[#allocation2 + $0x290] sm:$0xff] %v229_v8 }
  0x2d   :  { %123 = vst [vmem:[#allocation2 + $0x2a0] sm:$0xff] %v229_v8  ;;  %125 = vst [vmem:[#allocation2 + $0x2b0] sm:$0xff] %v229_v8 }
  0x2e   :  { %127 = vst [vmem:[#allocation2 + $0x2c0] sm:$0xff] %v229_v8  ;;  %129 = vst [vmem:[#allocation2 + $0x2d0] sm:$0xff] %v229_v8 }
  0x2f   :  { %131 = vst [vmem:[#allocation2 + $0x2e0] sm:$0xff] %v229_v8  ;;  %133 = vst [vmem:[#allocation2 + $0x2f0] sm:$0xff] %v229_v8 }
  0x30   :  { %135 = vst [vmem:[#allocation2 + $0x300] sm:$0xff] %v229_v8  ;;  %137 = vst [vmem:[#allocation2 + $0x310] sm:$0xff] %v229_v8 }
  0x31   :  { %139 = vst [vmem:[#allocation2 + $0x320] sm:$0xff] %v229_v8  ;;  %141 = vst [vmem:[#allocation2 + $0x330] sm:$0xff] %v229_v8 }
  0x32   :  { %143 = vst [vmem:[#allocation2 + $0x340] sm:$0xff] %v229_v8  ;;  %145 = vst [vmem:[#allocation2 + $0x350] sm:$0xff] %v229_v8 }
  0x33   :  { %147 = vst [vmem:[#allocation2 + $0x360] sm:$0xff] %v229_v8  ;;  %149 = vst [vmem:[#allocation2 + $0x370] sm:$0xff] %v229_v8 }
  0x34   :  { %151 = vst [vmem:[#allocation2 + $0x380] sm:$0xff] %v229_v8  ;;  %153 = vst [vmem:[#allocation2 + $0x390] sm:$0xff] %v229_v8 }
  0x35   :  { %155 = vst [vmem:[#allocation2 + $0x3a0] sm:$0xff] %v229_v8  ;;  %157 = vst [vmem:[#allocation2 + $0x3b0] sm:$0xff] %v229_v8 }
  0x36   :  { %159 = vst [vmem:[#allocation2 + $0x3c0] sm:$0xff] %v229_v8  ;;  %161 = vst [vmem:[#allocation2 + $0x3d0] sm:$0xff] %v229_v8 }
  0x37   :  { %163 = vst [vmem:[#allocation2 + $0x3e0] sm:$0xff] %v229_v8  ;;  %165 = vst [vmem:[#allocation2 + $0x3f0] sm:$0xff] %v229_v8 }
  0x38   :  { %104 = vst [vmem:[#allocation2 + $0x208] sm:$0xff] %v231_v9  ;;  %106 = vst [vmem:[#allocation2 + $0x218] sm:$0xff] %v231_v9 }
  0x39   :  { %108 = vst [vmem:[#allocation2 + $0x228] sm:$0xff] %v231_v9  ;;  %110 = vst [vmem:[#allocation2 + $0x238] sm:$0xff] %v231_v9 }
  0x3a   :  { %112 = vst [vmem:[#allocation2 + $0x248] sm:$0xff] %v231_v9  ;;  %114 = vst [vmem:[#allocation2 + $0x258] sm:$0xff] %v231_v9 }
  0x3b   :  { %116 = vst [vmem:[#allocation2 + $0x268] sm:$0xff] %v231_v9  ;;  %118 = vst [vmem:[#allocation2 + $0x278] sm:$0xff] %v231_v9 }
  0x3c   :  { %120 = vst [vmem:[#allocation2 + $0x288] sm:$0xff] %v231_v9  ;;  %122 = vst [vmem:[#allocation2 + $0x298] sm:$0xff] %v231_v9 }
  0x3d   :  { %124 = vst [vmem:[#allocation2 + $0x2a8] sm:$0xff] %v231_v9  ;;  %126 = vst [vmem:[#allocation2 + $0x2b8] sm:$0xff] %v231_v9 }
  0x3e   :  { %128 = vst [vmem:[#allocation2 + $0x2c8] sm:$0xff] %v231_v9  ;;  %130 = vst [vmem:[#allocation2 + $0x2d8] sm:$0xff] %v231_v9 }
  0x3f   :  { %132 = vst [vmem:[#allocation2 + $0x2e8] sm:$0xff] %v231_v9  ;;  %134 = vst [vmem:[#allocation2 + $0x2f8] sm:$0xff] %v231_v9 }
  0x40   :  { %136 = vst [vmem:[#allocation2 + $0x308] sm:$0xff] %v231_v9  ;;  %138 = vst [vmem:[#allocation2 + $0x318] sm:$0xff] %v231_v9 }
  0x41   :  { %140 = vst [vmem:[#allocation2 + $0x328] sm:$0xff] %v231_v9  ;;  %142 = vst [vmem:[#allocation2 + $0x338] sm:$0xff] %v231_v9 }
  0x42   :  { %144 = vst [vmem:[#allocation2 + $0x348] sm:$0xff] %v231_v9  ;;  %146 = vst [vmem:[#allocation2 + $0x358] sm:$0xff] %v231_v9 }
  0x43   :  { %148 = vst [vmem:[#allocation2 + $0x368] sm:$0xff] %v231_v9  ;;  %150 = vst [vmem:[#allocation2 + $0x378] sm:$0xff] %v231_v9 }
  0x44   :  { %152 = vst [vmem:[#allocation2 + $0x388] sm:$0xff] %v231_v9  ;;  %154 = vst [vmem:[#allocation2 + $0x398] sm:$0xff] %v231_v9 }
  0x45   :  { %156 = vst [vmem:[#allocation2 + $0x3a8] sm:$0xff] %v231_v9  ;;  %158 = vst [vmem:[#allocation2 + $0x3b8] sm:$0xff] %v231_v9 }
  0x46   :  { %160 = vst [vmem:[#allocation2 + $0x3c8] sm:$0xff] %v231_v9  ;;  %162 = vst [vmem:[#allocation2 + $0x3d8] sm:$0xff] %v231_v9 }
  0x47   :  { %164 = vst [vmem:[#allocation2 + $0x3e8] sm:$0xff] %v231_v9  ;;  %166 = vst [vmem:[#allocation2 + $0x3f8] sm:$0xff] %v231_v9 }
  0x48   :  { %198 = shalt.err (!%p195_p4)
}
  0x49   :  { %s199_s12 = scalar_lea.hbm %s349_s1, 16384 }
  0x4a   :  { %p200_p5 = scmp.ne.s32.totalorder %s349_s1, %s199_s12  ;;  %p203_p6 = scmp.lt.u32.totalorder %s199_s12, %s349_s1 }
  0x4c   :  { %p205_p7 = pnand %p203_p6, %p200_p5 }
  0x4e   :  { %208 = shalt.err (!%p205_p7)
}
  0x4f   :  { %s212_s17 = smov 256   ;;  %s213_s18 = smov 16  }
  0x50   :  { %178 = dma.vmem_to_hbm [thread:$0]  %s233_s9, 16384, %s349_s1, [#allocation3], %s212_s17, %s212_s17, %s213_s18  }
  0x51   :  { %209 = dma.done.wait [#allocation3], 16384  }
  0x52   :  { %210 = vsyncadd [#allocation3], 4294950912 }
  0x53   :  { %182 = vsyncpa [#allocation3], 1 }

// kernel: _full_seq_vae_forward.2
= control target key start
LH: loop header
LB: loop body
LE: loop exit
PB: predicated region body
PF: predicated region fallthrough
CT: control target
= control target key end

     0   :  { %s2345_s0 = inlined_call_operand.hbm [shape: f32[2,256,256], index: 0, kind: input, shape index: {}]   ;;  %s2346_s1 = inlined_call_operand.vmem [shape: f32[2,2,256], index: 1, kind: input, shape index: {}]   ;;  %s2347_s2 = inlined_call_operand.hbm [shape: f32[256,128], index: 2, kind: input, shape index: {}]   ;;  %s2348_s3 = inlined_call_operand.hbm [shape: f32[128,256], index: 3, kind: input, shape index: {}]   ;;  %s2349_s4 = inlined_call_operand.hbm [shape: f32[128,256], index: 4, kind: input, shape index: {}]   ;;  %s2350_s5 = inlined_call_operand.vmem [shape: f32[2,128], index: 5, kind: input, shape index: {}]   ;;  %s2351_s6 = inlined_call_operand.vmem [shape: f32[2,256], index: 6, kind: output, shape index: {0}]   ;;  %s2352_s7 = inlined_call_operand.hbm [shape: f32[1,1], index: 7, kind: output, shape index: {1}]   ;;  %s2353_s8 = inlined_call_operand.hbm [shape: f32[1,1], index: 8, kind: output, shape index: {2}]  }
   0x1   :  { %2360 = sst [smem:[#allocation25_spill]] %s2347_s2 }
   0x2   :  { %14 = vsyncpa [#allocation5], 0 }
   0x3   :  { %16 = vsyncpa [#allocation5 + $0x1], 0 }
   0x4   :  { %17 = vsyncpa [#allocation8], 0 }
   0x5   :  { %18 = vsyncpa [#allocation11], 0 }
   0x6   :  { %19 = vsyncpa [#allocation6], 0 }
   0x7   :  { %20 = vsyncpa [#allocation14], 0  ;;  %s2006_s27 = smov 0   ;;  %s2008_s28 = smov 0  }
   0x8   :  { %s2010_s29 = smov 0   ;;  %s2012_s30 = smov 0  }
   0x9 LB: > { %s2025_s9 = sadd.s32 4294967295, %s1939_s30   ;;  %s2028_s10 = sadd.s32 1, %s1939_s30   ;;  %s1939_s30 = sphi %s2012_s30, %s2377_s30   ;;  %s1935_s29 = sphi %s2010_s29, %s2381_s29   ;;  %s1931_s28 = sphi %s2008_s28, %s2380_s28   ;;  %s1927_s27 = sphi %s2006_s27, %s2379_s27  }
   0xa   : > { %2361 = sst [smem:[#allocation23_spill]] %s2028_s10  ;;  %s30_s11 = ssub.s32 %s1939_s30, %s2028_s10 }
   0xb   : > { %s33_s12 = sadd.s32 1, %s1935_s29  ;;  %p31_p0 = scmp.eq.s32.totalorder %s30_s11, 0 }
   0xc   : > { %p40_p1 = scmp.ne.s32.totalorder %s1935_s29, %s1931_s28  ;;  %p41_p2 = scmp.eq.s32.totalorder %s1939_s30, 0 }
   0xd   : > { %p46_p3 = scmp.ne.s32.totalorder %s1931_s28, %s1927_s27  ;;  %p2354_p5 = scmp.eq.s32.totalorder %s2025_s9, 0 }
   0xe   : > { %s2038_s13 = scalar_select %p31_p0, %s1935_s29, %s33_s12  }
   0xf   : > { %p2040_p4 = por %p41_p2, %p40_p1  ;;  %p1437_p6 = scmp.ge.s32.totalorder %s1939_s30, 1 }
  0x10   : > { %2362 = sst [smem:[#allocation24_spill]] %s2038_s13  ;;  %p225_p7 = scmp.lt.s32.totalorder %s1939_s30, 3 }
  0x11   : > { %s2363_s14 = scalar_select %p2040_p4, 1, 0 }
  0x12   : > { %p2049_p8 = por %p2354_p5, %p46_p3  ;;  %p2054_p10 = pnand %p1437_p6, %p225_p7 }
  0x13   : > { %s1941_s17 = smov [#allocation7]   ;;  %s1942_s20 = smov [#allocation9]  }
  0x14   : > { %s2364_s15 = scalar_select %p2049_p8, 1, 0 }
  0x15   : > { %s2365_s16 = scalar_select %p2054_p10, 1, 0 }
  0x16   : > { %s240_s18 = sshll.u32 %s1941_s17, 4  ;;  %p1701_p11 = pneg %p2054_p10  ;;  %s241_s18 = int_to_ptr.vmem [resolvable:$true] %s240_s18 }
  0x17   : > { %s253_s21 = sshll.u32 %s1942_s20, 4  ;;  %s2367_s2 = sld [smem:[#allocation25_spill]]  ;;  %s2066_s21 = int_to_ptr.vmem [resolvable:$true] %s253_s21 }
  0x18   : > { %p2062_p12 = pnand %p1701_p11, %p2354_p5 }
  0x1a   : > { %p2076_p0 = pneg %p2062_p12 }
  0x1d   : > { %s1781_s24 = scalar_lea.hbm %s2367_s2, 4096 }
  0x1e   : > { %p1782_p13 = scmp.ne.s32.totalorder %s2367_s2, %s1781_s24  ;;  %p1788_p3 = scmp.lt.u32.totalorder %s1781_s24, %s2367_s2 }
  0x20   : > { %p1784_p1 = pnand %p2076_p0, %p1782_p13 }
  0x22   : > { %p1785_p2 = pneg %p1784_p1 }
  0x24   : > { %p1790_p6 = pnand %p1788_p3, %p1785_p2 }
  0x26   : > { %1793 = shalt.err (!%p1790_p6)
}
  0x27   : > { %s1794_s17 = scalar_lea.vmem %s241_s18, 4096  ;;  %p1802_p5 = scmp.lt.s32.totalorder %s241_s18, %s241_s18 }
  0x28   : > { %p1795_p7 = scmp.ne.s32.totalorder %s241_s18, %s1794_s17  ;;  %p1803_p8 = scmp.lt.s32.totalorder %s1794_s17, %s1794_s17 }
  0x2a   : > { %p1797_p11 = pnand %p1795_p7, %p2076_p0  ;;  %p1804_p10 = por %p1803_p8, %p1802_p5 }
  0x2c   : > { %p1798_p9 = pneg %p1797_p11 }
  0x2e   : > { %p1805_p4 = pnand %p1804_p10, %p1798_p9 }
  0x30   : > { %1808 = shalt.err (!%p1805_p4)
}
  0x31   : > { %s1943_s20 = smov 128   ;;  %s1944_s22 = smov 8  }
  0x32   : > { %1704 = dma.hbm_to_vmem [thread:$0]  (!%p2062_p12), %s2367_s2, 4096, %s241_s18, [#allocation8], %s1943_s20, %s1943_s20, %s1944_s22  }
  0x33   : > { %s1809_s11 = scalar_lea.hbm %s2348_s3, 4096 }
  0x34   : > { %p1810_p13 = scmp.ne.s32.totalorder %s2348_s3, %s1809_s11  ;;  %p1816_p8 = scmp.lt.u32.totalorder %s1809_s11, %s2348_s3 }
  0x36   : > { %p1812_p5 = pnand %p1810_p13, %p2076_p0 }
  0x38   : > { %p1813_p4 = pneg %p1812_p5 }
  0x3a   : > { %p1818_p9 = pnand %p1816_p8, %p1813_p4 }
  0x3c   : > { %1821 = shalt.err (!%p1818_p9)
}
  0x3d   : > { %s1822_s18 = scalar_lea.vmem %s2066_s21, 4096  ;;  %p1830_p3 = scmp.lt.s32.totalorder %s2066_s21, %s2066_s21 }
  0x3e   : > { %p1823_p10 = scmp.ne.s32.totalorder %s2066_s21, %s1822_s18  ;;  %p1831_p6 = scmp.lt.s32.totalorder %s1822_s18, %s1822_s18 }
  0x40   : > { %p1825_p1 = pnand %p1823_p10, %p2076_p0  ;;  %p1832_p7 = por %p1831_p6, %p1830_p3 }
  0x42   : > { %p1826_p2 = pneg %p1825_p1 }
  0x44   : > { %p1833_p11 = pnand %p1832_p7, %p1826_p2 }
  0x46   : > { %1836 = shalt.err (!%p1833_p11)
}
  0x47   : > { %s1945_s13 = smov 256   ;;  %s1946_s10 = smov 16  }
  0x48   : > { %1707 = dma.hbm_to_vmem [thread:$0]  (!%p2062_p12), %s2348_s3, 4096, %s2066_s21, [#allocation8], %s1945_s13, %s1945_s13, %s1946_s10  }
  0x49   : > { %s1947_s23 = smov [#allocation10]   ;;  %s1837_s11 = scalar_lea.hbm %s2349_s4, 4096 }
  0x4a   : > { %s266_s24 = sshll.u32 %s1947_s23, 4  ;;  %p1838_p13 = scmp.ne.s32.totalorder %s2349_s4, %s1837_s11  ;;  %s267_s24 = int_to_ptr.vmem [resolvable:$true] %s266_s24 }
  0x4b   : > { %p1844_p8 = scmp.lt.u32.totalorder %s1837_s11, %s2349_s4 }
  0x4c   : > { %p1840_p5 = pnand %p1838_p13, %p2076_p0 }
  0x4e   : > { %p1841_p4 = pneg %p1840_p5 }
  0x50   : > { %p1846_p9 = pnand %p1844_p8, %p1841_p4 }
  0x52   : > { %1849 = shalt.err (!%p1846_p9)
}
  0x53   : > { %s1850_s21 = scalar_lea.vmem %s267_s24, 4096  ;;  %p1858_p3 = scmp.lt.s32.totalorder %s267_s24, %s267_s24 }
  0x54   : > { %p1851_p10 = scmp.ne.s32.totalorder %s267_s24, %s1850_s21  ;;  %p1859_p6 = scmp.lt.s32.totalorder %s1850_s21, %s1850_s21 }
  0x56   : > { %p1853_p1 = pnand %p1851_p10, %p2076_p0  ;;  %p1860_p7 = por %p1859_p6, %p1858_p3 }
  0x58   : > { %p1854_p2 = pneg %p1853_p1 }
  0x5a   : > { %p1861_p11 = pnand %p1860_p7, %p1854_p2 }
  0x5c   : > { %1864 = shalt.err (!%p1861_p11)
}
  0x5d   : > { %1710 = dma.hbm_to_vmem [thread:$0]  (!%p2062_p12), %s2349_s4, 4096, %s267_s24, [#allocation11], %s1945_s13, %s1945_s13, %s1946_s10  }
  0x5e   : > { %p1441_p13 = scmp.ge.s32.totalorder %s1939_s30, 2 }
  0x60   : > { %279 = sbr.rel (%p1441_p13) target bundleno = 117 (0x75), region = 36 }
  0x67   : > { %s283_s2 = sand.u32 1, %s1935_s29   ;;  %s1468_s23 = sshll.u32 %s1939_s30, 12 }
  0x68   : > { %s1442_s27 = sshll.u32 %s283_s2, 9  ;;  %p2369_p0 = scmp.ne.s32.totalorder %s2363_s14, 0 }
  0x69   : > { %s294_s13 = scalar_lea.hbm %s2345_s0, %s1468_s23  ;;  %s287_s24 = scalar_lea.vmem [#allocation4], %s1442_s27 }
  0x6a   : > { %s1678_s19 = scalar_select %p2369_p0, [#allocation0], [#allocation17] }
  0x6b   : > { %s307_s11 = sshll.u32 %s287_s24, 4  ;;  %s1948_s12 = smov 8192   ;;  %s308_s11 = int_to_ptr.vmem [resolvable:$true] %s307_s11 }
  0x6c   : > { %s299_s10 = sld [smem:[%s1678_s19]]   ;;  %s1949_s17 = smov 4096  }
  0x6d   : > { %1679 = sst [smem:[#allocation16]] (%p2369_p0), %s1948_s12  ;;  %s1950_s18 = smov 16  }
  0x6e   : > { %1680 = sst [smem:[#allocation16 + $0x1]] (%p2369_p0), %s1949_s17  ;;  %s1951_s30 = smov 256  }
  0x6f   : > { %1681 = sst [smem:[#allocation16 + $0x2]] (%p2369_p0), %s1950_s18  ;;  %s284_s22 = scalar_lea.sflag [#allocation5], %s283_s2 }
  0x70   : > { %1682 = sst [smem:[#allocation16 + $0x3]] (%p2369_p0), %s1951_s30  ;;  %s1952_s27 = smov [#allocation15]  }
  0x71   : > { %1683 = sst [smem:[#allocation16 + $0x4]] (%p2369_p0), %s1951_s30 }
  0x72   : > { %s1446_s21 = sshll.u32 %s299_s10, 26  ;;  %1684 = sst [smem:[#allocation16 + $0x5]] (%p2369_p0), %s1950_s18 }
  0x73   : > { %s1447_s20 = sadd.s32 134217728, %s1446_s21 }
  0x74   : > { %1685 = dma.general (%p2369_p0), %s294_s13, 8192, %s308_s11, %s284_s22, %s1952_s27, [#allocation16], %s1447_s20, 0  }
  0x75 PF: > { %p2370_p12 = scmp.ne.s32.totalorder %s2365_s16, 0 }
  0x76   : > { %s334_s23 = sand.u32 (!%p2370_p12), 1, %s1931_s28   ;;  %p2371_p5 = scmp.ne.s32.totalorder (!%p2370_p12), %s2364_s15, 0 }
  0x77   : > { %332 = sbr.rel (%p2370_p12) target bundleno = 1335 (0x537), region = 44  ;;  %s1449_s19 = sshll.u32 (!%p2370_p12), %s334_s23, 9 }
  0x78   : > { %s335_s25 = scalar_lea.sflag (!%p2370_p12), [#allocation5], %s334_s23  ;;  %s2158_s26 = scalar_lea.vmem (!%p2370_p12), [#allocation4], %s1449_s19 }
  0x7e   : > { %1906 = dma.done.wait (%p2371_p5), %s335_s25, 8192  }
  0x7f   : > { %1908 = vsyncadd (%p2371_p5), %s335_s25, 4294959104  ;;  %p2372_p4 = scmp.eq.s32.totalorder %s2025_s9, 0 }
  0x81   : > { %1910 = dma.done.wait (%p2372_p4), [#allocation8], 8192   ;;  %p2373_p8 = pmov %p2372_p4 }
  0x82   : > { %p2374_p9 = pmov %p2372_p4 }
  0x83   : > { %1912 = vsyncadd (%p2373_p8), [#allocation8], 4294959104 }
  0x84   : > { %1914 = dma.done.wait (%p2374_p9), [#allocation11], 4096   ;;  %p2375_p10 = pmov %p2372_p4 }
  0x85   : > { %p2376_p1 = scmp.ne.s32.totalorder %s2025_s9, 0 }
  0x86   : > { %1916 = vsyncadd (%p2375_p10), [#allocation11], 4294963200  ;;  %v1953_v0 = vmov (!%p2376_p1), 0.0  }
  0x87   : > { %382 = sbr.rel (%p2376_p1) target bundleno = 142 (0x8e), region = 64  ;;  %383 = vst [vmem:[#allocation2] sm:$0xf] (!%p2376_p1), %v1953_v0  ;;  %384 = vst [vmem:[#allocation2 + $0x4] sm:$0xf] (!%p2376_p1), %v1953_v0 }
  0x88   : > { %385 = vst [vmem:[#allocation3] sm:$0xf] (!%p2376_p1), %v1953_v0 }
  0x8e PF: > { %v387_v1 = vld [vmem:[%s2158_s26 + $0x8] sm:$0xff]  ;;  %v389_v2 = vld [vmem:[%s2158_s26 + $0x18] sm:$0xff]  ;;  %v386_v9 = vld [vmem:[%s2158_s26] sm:$0xff]  ;;  %v1954_v11 = vmov 0.0   ;;  %s1454_s14 = sshll.u32 %s2025_s9, 7  ;;  %vm801_vm0 = vcmask 1041409  }
  0x8f   : > { %v419_v3 = vld [vmem:[%s2158_s26 + $0x108] sm:$0xff]  ;;  %v1504_v4 = vpack.c.bf16 %v389_v2, %v387_v1  ;;  %v629_v5 = vmul.f32 %v387_v1, %v387_v1  ;;  %v631_v6 = vmul.f32 %v389_v2, %v389_v2  ;;  %v421_v7 = vld [vmem:[%s2158_s26 + $0x118] sm:$0xff]  ;;  %v388_v10 = vld [vmem:[%s2158_s26 + $0x10] sm:$0xff]  ;;  %521 = vmatprep.mubr.f32.mxu0 %v1954_v11  ;;  %v628_v15 = vmul.f32 %v386_v9, %v386_v9  ;;  %s2229_s15 = sshra.s32 %s1454_s14, 7  ;;  %p1456_p2 = scmp.ne.s32.totalorder %s2025_s9, 1 }
  0x90   : > { %v661_v8 = vmul.f32 %v419_v3, %v419_v3  ;;  %v1536_v12 = vpack.c.bf16 %v421_v7, %v419_v3  ;;  %v663_v13 = vmul.f32 %v421_v7, %v421_v7  ;;  %v1506_v14 = vpack.c.bf16 %v388_v10, %v386_v9  ;;  %v418_v16 = vld [vmem:[%s2158_s26 + $0x100] sm:$0xff]  ;;  %v420_v17 = vld [vmem:[%s2158_s26 + $0x110] sm:$0xff]  ;;  %v391_v18 = vld [vmem:[%s2158_s26 + $0x28] sm:$0xff]  ;;  %592 = vmatprep.mubr.f32.mxu1 %v1954_v11  ;;  %s1455_s16 = sshll.u32 %s2229_s15, 1 }
  0x91   : > { %1505 = vmatprep.subr.bf16.mxu0 %v1504_v4  ;;  %v713_v19 = vadd.f32 %v631_v6, %v629_v5  ;;  %v630_v20 = vmul.f32 %v388_v10, %v388_v10  ;;  %v1538_v21 = vpack.c.bf16 %v420_v17, %v418_v16  ;;  %v660_v22 = vmul.f32 %v418_v16, %v418_v16  ;;  %v393_v23 = vld [vmem:[%s2158_s26 + $0x38] sm:$0xff]  ;;  %v423_v24 = vld [vmem:[%s2158_s26 + $0x128] sm:$0xff]  ;;  %v390_v29 = vld [vmem:[%s2158_s26 + $0x20] sm:$0xff]  ;;  %s454_s10 = scalar_lea.vmem %s2346_s1, %s1455_s16 }
  0x92   : > { %v425_v25 = vld [vmem:[%s2158_s26 + $0x138] sm:$0xff]  ;;  %1537 = vmatprep.subr.bf16.mxu1 %v1536_v12  ;;  %v755_v26 = vadd.f32 %v663_v13, %v661_v8  ;;  %1507 = vmatpush1.bf16.msra.mxu0 %v1506_v14  ;;  %v662_v27 = vmul.f32 %v420_v17, %v420_v17  ;;  %v1508_v28 = vpack.c.bf16 %v393_v23, %v391_v18  ;;  %v392_v30 = vld [vmem:[%s2158_s26 + $0x30] sm:$0xff]  ;;  %v422_v31 = vld [vmem:[%s2158_s26 + $0x120] sm:$0xff]  ;;  %vm803_vm1 = vcmask 1043459  }
  0x93   : > { %v692_v32 = vadd.f32 %v630_v20, %v628_v15  ;;  %1539 = vmatpush1.bf16.msra.mxu1 %v1538_v21  ;;  %v633_v33 = vmul.f32 %v391_v18, %v391_v18  ;;  %v635_v34 = vmul.f32 %v393_v23, %v393_v23  ;;  %v1540_v35 = vpack.c.bf16 %v425_v25, %v423_v24  ;;  %v424_v36 = vld [vmem:[%s2158_s26 + $0x130] sm:$0xff]  ;;  %v395_v37 = vld [vmem:[%s2158_s26 + $0x48] sm:$0xff]  ;;  %v397_v38 = vld [vmem:[%s2158_s26 + $0x58] sm:$0xff] }
  0x94   : > { %v734_v39 = vadd.f32 %v662_v27, %v660_v22  ;;  %1509 = vmatprep.subr.bf16.mxu0 %v1508_v28  ;;  %v665_v40 = vmul.f32 %v423_v24, %v423_v24  ;;  %v667_v41 = vmul.f32 %v425_v25, %v425_v25  ;;  %v1510_v42 = vpack.c.bf16 %v392_v30, %v390_v29  ;;  %v427_v47 = vld [vmem:[%s2158_s26 + $0x148] sm:$0xff]  ;;  %v429_v48 = vld [vmem:[%s2158_s26 + $0x158] sm:$0xff]  ;;  %v394_v53 = vld [vmem:[%s2158_s26 + $0x40] sm:$0xff] }
  0x95   : > { %v714_v43 = vadd.f32 %v713_v19, %v633_v33  ;;  %1541 = vmatprep.subr.bf16.mxu1 %v1540_v35  ;;  %v632_v44 = vmul.f32 %v390_v29, %v390_v29  ;;  %v634_v45 = vmul.f32 %v392_v30, %v392_v30  ;;  %v1542_v46 = vpack.c.bf16 %v424_v36, %v422_v31  ;;  %v396_v54 = vld [vmem:[%s2158_s26 + $0x50] sm:$0xff]  ;;  %v426_v63 = vld [vmem:[%s2158_s26 + $0x140] sm:$0xff]  ;;  %v399_v5 = vld [vmem:[%s2158_s26 + $0x68] sm:$0xff] }
  0x96   : > { %v756_v49 = vadd.f32 %v755_v26, %v665_v40  ;;  %1511 = vmatpush1.bf16.msra.mxu0 %v1510_v42  ;;  %v664_v50 = vmul.f32 %v422_v31, %v422_v31  ;;  %v666_v51 = vmul.f32 %v424_v36, %v424_v36  ;;  %v1512_v52 = vpack.c.bf16 %v397_v38, %v395_v37  ;;  %v428_v0 = vld [vmem:[%s2158_s26 + $0x150] sm:$0xff]  ;;  %v401_v6 = vld [vmem:[%s2158_s26 + $0x78] sm:$0xff]  ;;  %v431_v11 = vld [vmem:[%s2158_s26 + $0x168] sm:$0xff] }
  0x97   : > { %v715_v55 = vadd.f32 %v714_v43, %v635_v34  ;;  %v693_v56 = vadd.f32 %v692_v32, %v632_v44  ;;  %1543 = vmatpush1.bf16.msra.mxu1 %v1542_v46  ;;  %v637_v57 = vmul.f32 %v395_v37, %v395_v37  ;;  %v639_v58 = vmul.f32 %v397_v38, %v397_v38  ;;  %v433_v12 = vld [vmem:[%s2158_s26 + $0x178] sm:$0xff]  ;;  %v398_v17 = vld [vmem:[%s2158_s26 + $0x60] sm:$0xff]  ;;  %v400_v18 = vld [vmem:[%s2158_s26 + $0x70] sm:$0xff] }
  0x98   : > { %v757_v59 = vadd.f32 %v756_v49, %v667_v41  ;;  %v735_v60 = vadd.f32 %v734_v39, %v664_v50  ;;  %1513 = vmatprep.subr.bf16.mxu0 %v1512_v52  ;;  %v1544_v61 = vpack.c.bf16 %v429_v48, %v427_v47  ;;  %v669_v62 = vmul.f32 %v427_v47, %v427_v47  ;;  %v430_v27 = vld [vmem:[%s2158_s26 + $0x160] sm:$0xff]  ;;  %v432_v28 = vld [vmem:[%s2158_s26 + $0x170] sm:$0xff]  ;;  %v403_v33 = vld [vmem:[%s2158_s26 + $0x88] sm:$0xff] }
  0x99   : > { %v694_v1 = vadd.f32 %v693_v56, %v634_v45  ;;  %v716_v2 = vadd.f32 %v715_v55, %v637_v57  ;;  %v671_v3 = vmul.f32 %v429_v48, %v429_v48  ;;  %v1514_v4 = vpack.c.bf16 %v396_v54, %v394_v53  ;;  %v405_v34 = vld [vmem:[%s2158_s26 + $0x98] sm:$0xff]  ;;  %v435_v39 = vld [vmem:[%s2158_s26 + $0x188] sm:$0xff]  ;;  %v402_v45 = vld [vmem:[%s2158_s26 + $0x80] sm:$0xff] }
  0x9a   : > { %v736_v7 = vadd.f32 %v735_v60, %v666_v51  ;;  %1545 = vmatprep.subr.bf16.mxu1 %v1544_v61  ;;  %v758_v8 = vadd.f32 %v757_v59, %v669_v62  ;;  %v636_v9 = vmul.f32 %v394_v53, %v394_v53  ;;  %v638_v10 = vmul.f32 %v396_v54, %v396_v54  ;;  %v437_v40 = vld [vmem:[%s2158_s26 + $0x198] sm:$0xff]  ;;  %v404_v46 = vld [vmem:[%s2158_s26 + $0x90] sm:$0xff]  ;;  %v434_v55 = vld [vmem:[%s2158_s26 + $0x180] sm:$0xff] }
  0x9b   : > { %v717_v13 = vadd.f32 %v716_v2, %v639_v58  ;;  %1515 = vmatpush1.bf16.msra.mxu0 %v1514_v4  ;;  %v1546_v14 = vpack.c.bf16 %v428_v0, %v426_v63  ;;  %v668_v15 = vmul.f32 %v426_v63, %v426_v63  ;;  %v670_v16 = vmul.f32 %v428_v0, %v428_v0  ;;  %v436_v56 = vld [vmem:[%s2158_s26 + $0x190] sm:$0xff]  ;;  %v407_v61 = vld [vmem:[%s2158_s26 + $0xa8] sm:$0xff]  ;;  %v409_v62 = vld [vmem:[%s2158_s26 + $0xb8] sm:$0xff] }
  0x9c   : > { %v759_v19 = vadd.f32 %v758_v8, %v671_v3  ;;  %v695_v20 = vadd.f32 %v694_v1, %v636_v9  ;;  %v1516_v21 = vpack.c.bf16 %v401_v6, %v399_v5  ;;  %v641_v22 = vmul.f32 %v399_v5, %v399_v5  ;;  %v439_v3 = vld [vmem:[%s2158_s26 + $0x1a8] sm:$0xff]  ;;  %v441_v4 = vld [vmem:[%s2158_s26 + $0x1b8] sm:$0xff]  ;;  %v406_v9 = vld [vmem:[%s2158_s26 + $0xa0] sm:$0xff] }
  0x9d   : > { %1547 = vmatpush1.bf16.msra.mxu1 %v1546_v14  ;;  %v737_v23 = vadd.f32 %v736_v7, %v668_v15  ;;  %v643_v24 = vmul.f32 %v401_v6, %v401_v6  ;;  %v1548_v25 = vpack.c.bf16 %v433_v12, %v431_v11  ;;  %v673_v26 = vmul.f32 %v431_v11, %v431_v11 }
  0x9e   : > { %v696_v29 = vadd.f32 %v695_v20, %v638_v10  ;;  %1517 = vmatprep.subr.bf16.mxu0 %v1516_v21  ;;  %v718_v30 = vadd.f32 %v717_v13, %v641_v22  ;;  %v675_v31 = vmul.f32 %v433_v12, %v433_v12  ;;  %v1518_v32 = vpack.c.bf16 %v400_v18, %v398_v17  ;;  %v408_v10 = vld [vmem:[%s2158_s26 + $0xb0] sm:$0xff] }
  0x9f   : > { %v738_v35 = vadd.f32 %v737_v23, %v670_v16  ;;  %1549 = vmatprep.subr.bf16.mxu1 %v1548_v25  ;;  %v760_v36 = vadd.f32 %v759_v19, %v673_v26  ;;  %v640_v37 = vmul.f32 %v398_v17, %v398_v17  ;;  %v642_v38 = vmul.f32 %v400_v18, %v400_v18  ;;  %v438_v19 = vld [vmem:[%s2158_s26 + $0x1a0] sm:$0xff]  ;;  %v440_v20 = vld [vmem:[%s2158_s26 + $0x1b0] sm:$0xff]  ;;  %v411_v25 = vld [vmem:[%s2158_s26 + $0xc8] sm:$0xff] }
  0xa0   : > { %v719_v41 = vadd.f32 %v718_v30, %v643_v24  ;;  %1519 = vmatpush1.bf16.msra.mxu0 %v1518_v32  ;;  %v1550_v42 = vpack.c.bf16 %v432_v28, %v430_v27  ;;  %v672_v43 = vmul.f32 %v430_v27, %v430_v27  ;;  %v674_v44 = vmul.f32 %v432_v28, %v432_v28  ;;  %v413_v26 = vld [vmem:[%s2158_s26 + $0xd8] sm:$0xff] }
  0xa1   : > { %v761_v47 = vadd.f32 %v760_v36, %v675_v31  ;;  %v697_v48 = vadd.f32 %v696_v29, %v640_v37  ;;  %v1520_v49 = vpack.c.bf16 %v405_v34, %v403_v33  ;;  %v645_v50 = vmul.f32 %v403_v33, %v403_v33  ;;  %v443_v31 = vld [vmem:[%s2158_s26 + $0x1c8] sm:$0xff]  ;;  %v445_v32 = vld [vmem:[%s2158_s26 + $0x1d8] sm:$0xff]  ;;  %v410_v37 = vld [vmem:[%s2158_s26 + $0xc0] sm:$0xff] }
  0xa2   : > { %1551 = vmatpush1.bf16.msra.mxu1 %v1550_v42  ;;  %v739_v51 = vadd.f32 %v738_v35, %v672_v43  ;;  %v647_v52 = vmul.f32 %v405_v34, %v405_v34  ;;  %v1552_v53 = vpack.c.bf16 %v437_v40, %v435_v39  ;;  %v677_v54 = vmul.f32 %v435_v39, %v435_v39 }
  0xa3   : > { %v698_v57 = vadd.f32 %v697_v48, %v642_v38  ;;  %1521 = vmatprep.subr.bf16.mxu0 %v1520_v49  ;;  %v720_v58 = vadd.f32 %v719_v41, %v645_v50  ;;  %v679_v59 = vmul.f32 %v437_v40, %v437_v40  ;;  %v1522_v60 = vpack.c.bf16 %v404_v46, %v402_v45  ;;  %v412_v38 = vld [vmem:[%s2158_s26 + $0xd0] sm:$0xff] }
  0xa4   : > { %v740_v63 = vadd.f32 %v739_v51, %v674_v44  ;;  %1553 = vmatprep.subr.bf16.mxu1 %v1552_v53  ;;  %v762_v0 = vadd.f32 %v761_v47, %v677_v54  ;;  %v644_v1 = vmul.f32 %v402_v45, %v402_v45  ;;  %v646_v2 = vmul.f32 %v404_v46, %v404_v46  ;;  %v442_v47 = vld [vmem:[%s2158_s26 + $0x1c0] sm:$0xff]  ;;  %v444_v48 = vld [vmem:[%s2158_s26 + $0x1d0] sm:$0xff]  ;;  %v415_v53 = vld [vmem:[%s2158_s26 + $0xe8] sm:$0xff] }
  0xa5   : > { %v721_v5 = vadd.f32 %v720_v58, %v647_v52  ;;  %1523 = vmatpush1.bf16.msra.mxu0 %v1522_v60  ;;  %v1554_v6 = vpack.c.bf16 %v436_v56, %v434_v55  ;;  %v676_v7 = vmul.f32 %v434_v55, %v434_v55  ;;  %v678_v8 = vmul.f32 %v436_v56, %v436_v56  ;;  %v417_v54 = vld [vmem:[%s2158_s26 + $0xf8] sm:$0xff] }
  0xa6   : > { %v763_v11 = vadd.f32 %v762_v0, %v679_v59  ;;  %v699_v12 = vadd.f32 %v698_v57, %v644_v1  ;;  %v1524_v13 = vpack.c.bf16 %v409_v62, %v407_v61  ;;  %v649_v14 = vmul.f32 %v407_v61, %v407_v61  ;;  %v447_v59 = vld [vmem:[%s2158_s26 + $0x1e8] sm:$0xff]  ;;  %v449_v60 = vld [vmem:[%s2158_s26 + $0x1f8] sm:$0xff]  ;;  %v414_v1 = vld [vmem:[%s2158_s26 + $0xe0] sm:$0xff] }
  0xa7   : > { %1555 = vmatpush1.bf16.msra.mxu1 %v1554_v6  ;;  %v741_v15 = vadd.f32 %v740_v63, %v676_v7  ;;  %v651_v16 = vmul.f32 %v409_v62, %v409_v62  ;;  %v1556_v17 = vpack.c.bf16 %v441_v4, %v439_v3  ;;  %v681_v18 = vmul.f32 %v439_v3, %v439_v3 }
  0xa8   : > { %v700_v21 = vadd.f32 %v699_v12, %v646_v2  ;;  %1525 = vmatprep.subr.bf16.mxu0 %v1524_v13  ;;  %v722_v22 = vadd.f32 %v721_v5, %v649_v14  ;;  %v683_v23 = vmul.f32 %v441_v4, %v441_v4  ;;  %v1526_v24 = vpack.c.bf16 %v408_v10, %v406_v9  ;;  %v416_v2 = vld [vmem:[%s2158_s26 + $0xf0] sm:$0xff] }
  0xa9   : > { %v742_v27 = vadd.f32 %v741_v15, %v678_v8  ;;  %1557 = vmatprep.subr.bf16.mxu1 %v1556_v17  ;;  %v764_v28 = vadd.f32 %v763_v11, %v681_v18  ;;  %v648_v29 = vmul.f32 %v406_v9, %v406_v9  ;;  %v650_v30 = vmul.f32 %v408_v10, %v408_v10  ;;  %v446_v11 = vld [vmem:[%s2158_s26 + $0x1e0] sm:$0xff]  ;;  %v448_v12 = vld [vmem:[%s2158_s26 + $0x1f0] sm:$0xff] }
  0xaa   : > { %v723_v33 = vadd.f32 %v722_v22, %v651_v16  ;;  %1527 = vmatpush1.bf16.msra.mxu0 %v1526_v24  ;;  %v1558_v34 = vpack.c.bf16 %v440_v20, %v438_v19  ;;  %v680_v35 = vmul.f32 %v438_v19, %v438_v19  ;;  %v682_v36 = vmul.f32 %v440_v20, %v440_v20 }
  0xab   : > { %v765_v39 = vadd.f32 %v764_v28, %v683_v23  ;;  %v701_v40 = vadd.f32 %v700_v21, %v648_v29  ;;  %v1528_v41 = vpack.c.bf16 %v413_v26, %v411_v25  ;;  %v653_v42 = vmul.f32 %v411_v25, %v411_v25  ;;  %v455_v25 = vld [vmem:[%s454_s10] sm:$0x3] }
  0xac   : > { %1559 = vmatpush1.bf16.msra.mxu1 %v1558_v34  ;;  %v743_v43 = vadd.f32 %v742_v27, %v680_v35  ;;  %v655_v44 = vmul.f32 %v413_v26, %v413_v26  ;;  %v1560_v45 = vpack.c.bf16 %v445_v32, %v443_v31  ;;  %v685_v46 = vmul.f32 %v443_v31, %v443_v31 }
  0xad   : > { %v702_v49 = vadd.f32 %v701_v40, %v650_v30  ;;  %1529 = vmatprep.subr.bf16.mxu0 %v1528_v41  ;;  %v724_v50 = vadd.f32 %v723_v33, %v653_v42  ;;  %v687_v51 = vmul.f32 %v445_v32, %v445_v32  ;;  %v1530_v52 = vpack.c.bf16 %v412_v38, %v410_v37  ;;  %v456_v30 = vld [vmem:[%s454_s10 + $0x4] sm:$0x3] }
  0xae   : > { %v744_v55 = vadd.f32 %v743_v43, %v682_v36  ;;  %1561 = vmatprep.subr.bf16.mxu1 %v1560_v45  ;;  %v766_v56 = vadd.f32 %v765_v39, %v685_v46  ;;  %v652_v57 = vmul.f32 %v410_v37, %v410_v37  ;;  %v654_v58 = vmul.f32 %v412_v38, %v412_v38 }
  0xaf   : > { %v725_v61 = vadd.f32 %v724_v50, %v655_v44  ;;  %1531 = vmatpush1.bf16.msra.mxu0 %v1530_v52  ;;  %v1562_v62 = vpack.c.bf16 %v444_v48, %v442_v47  ;;  %v684_v63 = vmul.f32 %v442_v47, %v442_v47  ;;  %v686_v0 = vmul.f32 %v444_v48, %v444_v48 }
  0xb0   : > { %v767_v3 = vadd.f32 %v766_v56, %v687_v51  ;;  %v703_v4 = vadd.f32 %v702_v49, %v652_v57  ;;  %v1532_v5 = vpack.c.bf16 %v417_v54, %v415_v53  ;;  %v657_v6 = vmul.f32 %v415_v53, %v415_v53 }
  0xb1   : > { %1563 = vmatpush1.bf16.msra.mxu1 %v1562_v62  ;;  %v745_v7 = vadd.f32 %v744_v55, %v684_v63  ;;  %v659_v8 = vmul.f32 %v417_v54, %v417_v54  ;;  %v1564_v9 = vpack.c.bf16 %v449_v60, %v447_v59  ;;  %v689_v10 = vmul.f32 %v447_v59, %v447_v59 }
  0xb2   : > { %v704_v13 = vadd.f32 %v703_v4, %v654_v58  ;;  %1533 = vmatprep.subr.bf16.mxu0 %v1532_v5  ;;  %v726_v14 = vadd.f32 %v725_v61, %v657_v6  ;;  %v691_v15 = vmul.f32 %v449_v60, %v449_v60  ;;  %v1534_v16 = vpack.c.bf16 %v416_v2, %v414_v1  ;;  %v627_v6 = vld [vmem:[#allocation3] sm:$0xf] }
  0xb3   : > { %v746_v17 = vadd.f32 %v745_v7, %v686_v0  ;;  %1565 = vmatprep.subr.bf16.mxu1 %v1564_v9  ;;  %v768_v18 = vadd.f32 %v767_v3, %v689_v10  ;;  %v656_v19 = vmul.f32 %v414_v1, %v414_v1  ;;  %v658_v20 = vmul.f32 %v416_v2, %v416_v2 }
  0xb4   : > { %v727_v21 = vadd.f32 %v726_v14, %v659_v8  ;;  %1535 = vmatpush1.bf16.msra.mxu0 %v1534_v16  ;;  %v1566_v22 = vpack.c.bf16 %v448_v12, %v446_v11  ;;  %v688_v23 = vmul.f32 %v446_v11, %v446_v11  ;;  %v690_v24 = vmul.f32 %v448_v12, %v448_v12 }
  0xb5   : > { %v769_v26 = vadd.f32 %v768_v18, %v691_v15  ;;  %v705_v27 = vadd.f32 %v704_v13, %v656_v19  ;;  %v1955_v58 = vmov 1983009808   ;;  %v609_v60 = vlaneseq  ;;  %v599_v13 = vld [vmem:[#allocation2] sm:$0xf] }
  0xb6   : > { %v728_v28 = vrot.slane %v727_v21, 4  ;;  %1567 = vmatpush1.bf16.msra.mxu1 %v1566_v22  ;;  %v747_v29 = vadd.f32 %v746_v17, %v688_v23  ;;  %v607_v59 = vunpack.c.l.s4 %v1955_v58  ;;  %vm805_vm2 = vcmask 1045509   ;;  %v600_v17 = vld [vmem:[#allocation2 + $0x4] sm:$0xf]  ;;  %v886_v23 = vld [vmem:[#allocation7 + $0x80] sm:$0xff] (!%p1456_p2) }
  0xb7   : > { %v770_v31 = vrot.slane %v769_v26, 4  ;;  %v706_v32 = vadd.f32 %v705_v27, %v658_v20  ;;  %522 = vmatmul.mubr.f32.vlgmr.msra.gmra.mrb[0].mxu0 %v455_v25  ;;  %v2245_v62 = vshrl.u32 %v609_v60, 7  ;;  %vm807_vm3 = vcmask 1047559   ;;  %v1457_v22 = vld [vmem:[%s2346_s1 + $0x4] ss:$2 sm:$0x3] (!%p1456_p2) }
  0xb8   : > { %v729_v33 = vadd.f32 %v728_v28, %v727_v21  ;;  %v748_v34 = vadd.f32 %v747_v29, %v690_v24  ;;  %v608_v61 = vunpack.c.0.s8 %v607_v59  ;;  %v818_v21 = vld [vmem:[%s2346_s1] ss:$2 sm:$0x3] (!%p1456_p2)  ;;  %v887_v24 = vld [vmem:[#allocation7 + $0x88] sm:$0xff] (!%p1456_p2)  ;;  %v870_v25 = vld [vmem:[#allocation7] sm:$0xff] (!%p1456_p2)  ;;  %vm848_vm4 = vcmask (!%p1456_p2), 1041408  }
  0xb9   : > { %v771_v35 = vadd.f32 %v770_v31, %v769_v26  ;;  %v707_v36 = vrot.slane %v706_v32, 4  ;;  %593 = vmatmul.mubr.f32.vlgmr.msra.gmra.mrb[0].mxu1 %v456_v30  ;;  %v1956_v26 = vmov (!%p1456_p2), 1966171168   ;;  %v1568_v28 = vpack.c.bf16 (!%p1456_p2), %v887_v24, %v886_v23  ;;  %v871_v29 = vld [vmem:[#allocation7 + $0x8] sm:$0xff] (!%p1456_p2)  ;;  %v888_v30 = vld [vmem:[#allocation7 + $0x90] sm:$0xff] (!%p1456_p2)  ;;  %v889_v31 = vld [vmem:[#allocation7 + $0x98] sm:$0xff] (!%p1456_p2) }
  0xba   : > { %v730_v37 = vrot.slane %v729_v33, 2  ;;  %v749_v38 = vrot.slane %v748_v34, 4  ;;  %v611_v63 = vsub.s32 %v608_v61, %v2245_v62  ;;  %v825_v27 = vunpack.c.l.s4 (!%p1456_p2), %v1956_v26  ;;  %v894_v59 = vld [vmem:[#allocation7 + $0xc0] sm:$0xff] (!%p1456_p2)  ;;  %v895_v60 = vld [vmem:[#allocation7 + $0xc8] sm:$0xff] (!%p1456_p2)  ;;  %v996_v24 = vld [vmem:[#allocation9 + $0x10] sm:$0xff] (!%p1456_p2) }
  0xbb   : > { %v772_v39 = vrot.slane %v771_v35, 2  ;;  %v708_v40 = vadd.f32 %v707_v36, %v706_v32  ;;  %v1570_v32 = vpack.c.bf16 (!%p1456_p2), %v871_v29, %v870_v25  ;;  %v890_v36 = vld [vmem:[#allocation7 + $0xa0] sm:$0xff] (!%p1456_p2)  ;;  %1569 = vmatprep.subr.bf16.mxu0 (!%p1456_p2), %v1568_v28  ;;  %v1584_v61 = vpack.c.bf16 (!%p1456_p2), %v895_v60, %v894_v59  ;;  %v999_v25 = vld [vmem:[#allocation9 + $0x28] sm:$0xff] (!%p1456_p2)  ;;  %v1001_v26 = vld [vmem:[#allocation9 + $0x38] sm:$0xff] (!%p1456_p2) }
  0xbc   : > { %v731_v41 = vadd.f32 %v730_v37, %v729_v33  ;;  %v750_v42 = vadd.f32 %v749_v38, %v748_v34  ;;  %v1572_v33 = vpack.c.bf16 (!%p1456_p2), %v889_v31, %v888_v30  ;;  %v872_v34 = vld [vmem:[#allocation7 + $0x10] sm:$0xff] (!%p1456_p2)  ;;  %v823_v37 = vcombine.low (!%p1456_p2), %v818_v21, %v1457_v22  ;;  %v997_v21 = vld [vmem:[#allocation9 + $0x18] sm:$0xff] (!%p1456_p2)  ;;  %v994_v22 = vld [vmem:[#allocation9] sm:$0xff] (!%p1456_p2) }
  0xbd   : > { %v773_v43 = vadd.f32 %v772_v39, %v771_v35  ;;  %v709_v44 = vrot.slane %v708_v40, 2  ;;  %v873_v35 = vld [vmem:[#allocation7 + $0x18] sm:$0xff] (!%p1456_p2)  ;;  %v826_v38 = vunpack.c.0.s8 (!%p1456_p2), %v825_v27  ;;  %v891_v39 = vld [vmem:[#allocation7 + $0xa8] sm:$0xff] (!%p1456_p2)  ;;  %1571 = vmatpush3.bf16.msra.mxu0 (!%p1456_p2), %v1570_v32  ;;  %v1602_v27 = vpack.c.bf16 (!%p1456_p2), %v996_v24, %v994_v22  ;;  %v998_v29 = vld [vmem:[#allocation9 + $0x20] sm:$0xff] (!%p1456_p2) }
  0xbe   : > { %v732_v45 = vrot.slane %v731_v41, 1  ;;  %v751_v46 = vrot.slane %v750_v42, 2  ;;  %1573 = vmatprep.subr.bf16.mxu0 (!%p1456_p2), %v1572_v33  ;;  %v1604_v28 = vpack.c.bf16 (!%p1456_p2), %v1001_v26, %v999_v25  ;;  %v1000_v30 = vld [vmem:[#allocation9 + $0x30] sm:$0xff] (!%p1456_p2)  ;;  %v1003_v31 = vld [vmem:[#allocation9 + $0x48] sm:$0xff] (!%p1456_p2)  ;;  %v1005_v32 = vld [vmem:[#allocation9 + $0x58] sm:$0xff] (!%p1456_p2)  ;;  %vm1228_vm5 = vcmask (!%p1456_p2), 1024  }
  0xbf   : > { %v774_v47 = vrot.slane %v773_v43, 1  ;;  %v710_v48 = vadd.f32 %v709_v44, %v708_v40  ;;  %v1574_v40 = vpack.c.bf16 (!%p1456_p2), %v873_v35, %v872_v34  ;;  %v1606_v33 = vpack.c.bf16 (!%p1456_p2), %v1000_v30, %v998_v29  ;;  %v1002_v35 = vld [vmem:[#allocation9 + $0x40] sm:$0xff] (!%p1456_p2)  ;;  %v1020_v60 = vld [vmem:[#allocation9 + $0xd0] sm:$0xff] (!%p1456_p2)  ;;  %v1025_v22 = vld [vmem:[#allocation9 + $0xf8] sm:$0xff] (!%p1456_p2) }
  0xc0   : > { %v752_v49 = vadd.f32 %v751_v46, %v750_v42  ;;  %v733_v50 = vadd.f32 %v732_v45, %v731_v41  ;;  %v829_v41 = vsub.s32 (!%p1456_p2), %v826_v38, %v2245_v62  ;;  %v1576_v42 = vpack.c.bf16 (!%p1456_p2), %v891_v39, %v890_v36  ;;  %v1004_v36 = vld [vmem:[#allocation9 + $0x50] sm:$0xff] (!%p1456_p2)  ;;  %v1009_v38 = vld [vmem:[#allocation9 + $0x78] sm:$0xff] (!%p1456_p2)  ;;  %v1018_v59 = vld [vmem:[#allocation9 + $0xc0] sm:$0xff] (!%p1456_p2) }
  0xc1   : > { %v711_v51 = vrot.slane %v710_v48, 1  ;;  %v775_v52 = vadd.f32 %v774_v47, %v773_v43  ;;  %1575 = vmatpush3.bf16.msra.mxu0 (!%p1456_p2), %v1574_v40  ;;  %v1608_v34 = vpack.c.bf16 (!%p1456_p2), %v1005_v32, %v1003_v31  ;;  %v1610_v39 = vpack.c.bf16 (!%p1456_p2), %v1004_v36, %v1002_v35  ;;  %v1022_v24 = vld [vmem:[#allocation9 + $0xe0] sm:$0xff] (!%p1456_p2)  ;;  %v1024_v25 = vld [vmem:[#allocation9 + $0xf0] sm:$0xff] (!%p1456_p2)  ;;  %v1106_v29 = vld [vmem:[#allocation10 + $0x18] sm:$0xff] (!%p1456_p2) }
  0xc2   : > { %v753_v53 = vrot.slane %v752_v49, 1  ;;  %v830_v43 = vrot.slane (!%p1456_p2), %v823_v37, %v829_v41  ;;  %1577 = vmatprep.subr.bf16.mxu0 (!%p1456_p2), %v1576_v42  ;;  %v1007_v37 = vld [vmem:[#allocation9 + $0x68] sm:$0xff] (!%p1456_p2)  ;;  %v1008_v42 = vld [vmem:[#allocation9 + $0x70] sm:$0xff] (!%p1456_p2)  ;;  %v1630_v26 = vpack.c.bf16 (!%p1456_p2), %v1024_v25, %v1022_v24  ;;  %v1103_v30 = vld [vmem:[#allocation10] sm:$0xff] (!%p1456_p2) }
  0xc3   : > { %v712_v54 = vadd.f32 %v711_v51, %v710_v48  ;;  %v875_v51 = vld [vmem:[#allocation7 + $0x28] sm:$0xff] (!%p1456_p2)  ;;  %v1612_v40 = vpack.c.bf16 (!%p1456_p2), %v1009_v38, %v1007_v37  ;;  %v1105_v32 = vld [vmem:[#allocation10 + $0x10] sm:$0xff] (!%p1456_p2)  ;;  %v1107_v37 = vld [vmem:[#allocation10 + $0x20] sm:$0xff] (!%p1456_p2) }
  0xc4   : > { %v754_v55 = vadd.f32 %v753_v53, %v752_v49  ;;  %v831_v44 = vcombine.high (!%p1456_p2), %v830_v43, %v830_v43  ;;  %v838_v45 = vrot.slane (!%p1456_p2), %v830_v43, %v829_v41  ;;  %v892_v53 = vld [vmem:[#allocation7 + $0xb0] sm:$0xff] (!%p1456_p2)  ;;  %v1011_v43 = vld [vmem:[#allocation9 + $0x88] sm:$0xff] (!%p1456_p2)  ;;  %v1634_v35 = vpack.c.bf16 (!%p1456_p2), %v1105_v32, %v1103_v30 }
  0xc5   : > { %v780_v56 = vcombine.low %v712_v54, %v733_v50  ;;  %v874_v50 = vld [vmem:[#allocation7 + $0x20] sm:$0xff] (!%p1456_p2)  ;;  %v893_v54 = vld [vmem:[#allocation7 + $0xb8] sm:$0xff] (!%p1456_p2)  ;;  %v1109_v38 = vld [vmem:[#allocation10 + $0x30] sm:$0xff] (!%p1456_p2) }
  0xc6   : > { %v788_v57 = vcombine.low %v754_v55, %v775_v52  ;;  %v845_v46 = vrot.slane (!%p1456_p2), %v831_v44, %v829_v41  ;;  %v849_v47 = vsel (!%p1456_p2), %vm848_vm4, %v838_v45, 0.0  ;;  %v1578_v52 = vpack.c.bf16 (!%p1456_p2), %v875_v51, %v874_v50  ;;  %v1006_v41 = vld [vmem:[#allocation9 + $0x60] sm:$0xff] (!%p1456_p2)  ;;  %v1013_v44 = vld [vmem:[#allocation9 + $0x98] sm:$0xff] (!%p1456_p2)  ;;  %v1097_v30 = vld [vmem:[%s2350_s5] sm:$0x3] (!%p1456_p2) }
  0xc7   : > { %v787_v1 = vrot.slane %v780_v56, %v611_v63  ;;  %v1580_v55 = vpack.c.bf16 (!%p1456_p2), %v893_v54, %v892_v53  ;;  %v876_v56 = vld [vmem:[#allocation7 + $0x30] sm:$0xff] (!%p1456_p2)  ;;  %v1614_v45 = vpack.c.bf16 (!%p1456_p2), %v1008_v42, %v1006_v41  ;;  %v1017_v50 = vld [vmem:[#allocation9 + $0xb8] sm:$0xff] (!%p1456_p2)  ;;  %v1014_v53 = vld [vmem:[#allocation9 + $0xa0] sm:$0xff] (!%p1456_p2)  ;;  %v1638_v41 = vpack.c.bf16 (!%p1456_p2), %v1109_v38, %v1107_v37 }
  0xc8   : > { %v795_v0 = vrot.slane %v788_v57, %v611_v63  ;;  %v850_v48 = vsel (!%p1456_p2), %vm848_vm4, %v845_v46, 0.0  ;;  %1579 = vmatpush3.bf16.msra.mxu0 (!%p1456_p2), %v1578_v52  ;;  %v877_v57 = vld [vmem:[#allocation7 + $0x38] sm:$0xff] (!%p1456_p2)  ;;  %v1616_v46 = vpack.c.bf16 (!%p1456_p2), %v1013_v44, %v1011_v43  ;;  %v1016_v54 = vld [vmem:[#allocation9 + $0xb0] sm:$0xff] (!%p1456_p2)  ;;  %v1111_v43 = vld [vmem:[#allocation10 + $0x40] sm:$0xff] (!%p1456_p2) }
  0xc9   : > { %v851_v49 = vadd.f32 (!%p1456_p2), %v850_v48, %v849_v47  ;;  %v1582_v58 = vpack.c.bf16 (!%p1456_p2), %v877_v57, %v876_v56  ;;  %1581 = vmatprep.subr.bf16.mxu0 (!%p1456_p2), %v1580_v55  ;;  %v1010_v47 = vld [vmem:[#allocation9 + $0x80] sm:$0xff] (!%p1456_p2)  ;;  %v1012_v48 = vld [vmem:[#allocation9 + $0x90] sm:$0xff] (!%p1456_p2)  ;;  %v1019_v55 = vld [vmem:[#allocation9 + $0xc8] sm:$0xff] (!%p1456_p2)  ;;  %v1622_v57 = vpack.c.bf16 (!%p1456_p2), %v1016_v54, %v1014_v53 }
  0xca   : > { %v800_v2 = vrot.slane %v795_v0, 7  ;;  %v879_v0 = vld [vmem:[#allocation7 + $0x48] sm:$0xff] (!%p1456_p2)  ;;  %v1618_v51 = vpack.c.bf16 (!%p1456_p2), %v1012_v48, %v1010_v47  ;;  %v1021_v56 = vld [vmem:[#allocation9 + $0xd8] sm:$0xff] (!%p1456_p2)  ;;  %v1113_v44 = vld [vmem:[#allocation10 + $0x50] sm:$0xff] (!%p1456_p2) }
  0xcb   : > { %852 = vadd.xlane.f32.xlu0 (!%p1456_p2), %v851_v49  ;;  %v1015_v49 = vld [vmem:[#allocation9 + $0xa8] sm:$0xff] (!%p1456_p2)  ;;  %v1117_v53 = vld [vmem:[#allocation10 + $0x70] sm:$0xff] (!%p1456_p2) }
  0xcc   : > { %v802_v3 = vsel %vm801_vm0, %v800_v2, %v787_v1  ;;  %1583 = vmatpush3.bf16.msra.mxu0 (!%p1456_p2), %v1582_v58  ;;  %v1620_v52 = vpack.c.bf16 (!%p1456_p2), %v1017_v50, %v1015_v49  ;;  %v1624_v58 = vpack.c.bf16 (!%p1456_p2), %v1021_v56, %v1019_v55  ;;  %v1116_v49 = vld [vmem:[#allocation10 + $0x68] sm:$0xff] (!%p1456_p2)  ;;  %v1118_v50 = vld [vmem:[#allocation10 + $0x78] sm:$0xff] (!%p1456_p2) }
  0xcd   : > { %v804_v4 = vsel %vm803_vm1, %v800_v2, %v802_v3  ;;  %v897_v3 = vld [vmem:[#allocation7 + $0xd8] sm:$0xff] (!%p1456_p2)  ;;  %1585 = vmatprep.subr.bf16.mxu0 (!%p1456_p2), %v1584_v61  ;;  %v1626_v61 = vpack.c.bf16 (!%p1456_p2), %v1020_v60, %v1018_v59  ;;  %v1120_v55 = vld [vmem:[#allocation10 + $0x88] sm:$0xff] (!%p1456_p2)  ;;  %v1121_v59 = vld [vmem:[#allocation10 + $0x90] sm:$0xff] (!%p1456_p2) }
  0xce   : > { %v806_v5 = vsel %vm805_vm2, %v800_v2, %v804_v4  ;;  %v880_v4 = vld [vmem:[#allocation7 + $0x50] sm:$0xff] (!%p1456_p2)  ;;  %v1122_v56 = vld [vmem:[#allocation10 + $0x98] sm:$0xff] (!%p1456_p2) }
  0xcf   : > { %v808_v7 = vsel %vm807_vm3, %v800_v2, %v806_v5  ;;  %v896_v2 = vld [vmem:[#allocation7 + $0xd0] sm:$0xff] (!%p1456_p2) }
  0xd0   : > { %v810_v8 = vadd.f32 %v808_v7, %v627_v6  ;;  %v1588_v5 = vpack.c.bf16 (!%p1456_p2), %v897_v3, %v896_v2  ;;  %v881_v6 = vld [vmem:[#allocation7 + $0x58] sm:$0xff] (!%p1456_p2)  ;;  %v898_v7 = vld [vmem:[#allocation7 + $0xe0] sm:$0xff] (!%p1456_p2) }
  0xd2   : > { %811 = vst [vmem:[#allocation3] sm:$0xf] %v810_v8  ;;  %v899_v8 = vld [vmem:[#allocation7 + $0xe8] sm:$0xff] (!%p1456_p2) }
 0x158   : > { %v853_v3 = vpop.xlane.xlu0 (!%p1456_p2), %852 }
 0x18a   : > { %v523_v9 = vpop.f32.mrb[0].mxu0 }
 0x18b   : > { %v525_v10 = vpop.f32.mrb[1].mxu0 }
 0x18c   : > { %v594_v11 = vpop.f32.mrb[0].mxu1  ;;  %v605_v12 = vcombine.low %v523_v9, %v525_v10  ;;  %v1590_v9 = vpack.c.bf16 (!%p1456_p2), %v881_v6, %v880_v4  ;;  %v1592_v10 = vpack.c.bf16 (!%p1456_p2), %v899_v8, %v898_v7  ;;  %v854_v4 = vmax.f32 (!%p1456_p2), %v853_v3, 1.0 }
 0x18d   : > { %v596_v14 = vpop.f32.mrb[1].mxu1 }
 0x18e   : > { %v612_v15 = vrot.slane %v605_v12, %v611_v63  ;;  %v613_v16 = vcombine.low %v594_v11, %v596_v14  ;;  %815 = sbr.rel (%p1456_p2) target bundleno = 1307 (0x51b), region = 68  ;;  %v882_v11 = vld [vmem:[#allocation7 + $0x60] sm:$0xff] (!%p1456_p2)  ;;  %v883_v12 = vld [vmem:[#allocation7 + $0x68] sm:$0xff] (!%p1456_p2)  ;;  %v901_v14 = vld [vmem:[#allocation7 + $0xf8] sm:$0xff] (!%p1456_p2) }
 0x190   : > { %v623_v18 = vadd.f32 %v612_v15, %v599_v13  ;;  %v620_v19 = vrot.slane %v613_v16, %v611_v63  ;;  %v878_v63 = vld [vmem:[#allocation7 + $0x40] sm:$0xff] (!%p1456_p2)  ;;  %v900_v13 = vld [vmem:[#allocation7 + $0xf0] sm:$0xff] (!%p1456_p2)  ;;  %v1594_v15 = vpack.c.bf16 (!%p1456_p2), %v883_v12, %v882_v11  ;;  %v910_v11 = vsub.s32 (!%p1456_p2), 2, %v2245_v62 }
 0x191   : > { %v1586_v1 = vpack.c.bf16 (!%p1456_p2), %v879_v0, %v878_v63  ;;  %v1596_v16 = vpack.c.bf16 (!%p1456_p2), %v901_v14, %v900_v13  ;;  %v1957_v63 = vmov (!%p1456_p2), 269488144   ;;  %v906_v12 = vsub.s32 (!%p1456_p2), 0, %v2245_v62 }
 0x192   : > { %625 = vst [vmem:[#allocation2] sm:$0xf] %v623_v18  ;;  %v624_v20 = vadd.f32 %v620_v19, %v600_v17  ;;  %v884_v17 = vld [vmem:[#allocation7 + $0x70] sm:$0xff] (!%p1456_p2)  ;;  %v885_v18 = vld [vmem:[#allocation7 + $0x78] sm:$0xff] (!%p1456_p2)  ;;  %v857_v0 = vunpack.c.l.s4 (!%p1456_p2), %v1957_v63 }
 0x193   : > { %1587 = vmatpush3.bf16.msra.mxu0 (!%p1456_p2), %v1586_v1  ;;  %v1598_v19 = vpack.c.bf16 (!%p1456_p2), %v885_v18, %v884_v17  ;;  %v1126_v63 = vld [vmem:[#allocation10 + $0xb8] sm:$0xff] (!%p1456_p2) }
 0x194   : > { %626 = vst [vmem:[#allocation2 + $0x4] sm:$0xf] %v624_v20  ;;  %1589 = vmatprep.subr.bf16.mxu0 (!%p1456_p2), %v1588_v5  ;;  %v995_v20 = vld [vmem:[#allocation9 + $0x8] sm:$0xff] (!%p1456_p2)  ;;  %v858_v1 = vunpack.c.0.s8 (!%p1456_p2), %v857_v0 }
 0x195   : > { %v1600_v23 = vpack.c.bf16 %v997_v21, %v995_v20  ;;  %v1023_v21 = vld [vmem:[#allocation9 + $0xe8] sm:$0xff] }
 0x196   : > { %v861_v2 = vsub.s32 %v858_v1, %v2245_v62  ;;  %v1123_v1 = vld [vmem:[#allocation10 + $0xa0] sm:$0xff] }
 0x197   : > { %1591 = vmatpush3.bf16.msra.mxu0 %v1590_v9  ;;  %1601 = vmatprep.subr.bf16.mxu1 %v1600_v23  ;;  %v1628_v23 = vpack.c.bf16 %v1025_v22, %v1023_v21 }
 0x198   : > { %1593 = vmatprep.subr.bf16.mxu0 %v1592_v10  ;;  %1603 = vmatpush1.bf16.msra.mxu1 %v1602_v27  ;;  %v862_v5 = vrot.slane %v854_v4, %v861_v2  ;;  %v1958_v27 = vmov 0.0   ;;  %v1125_v2 = vld [vmem:[#allocation10 + $0xb0] sm:$0xff]  ;;  %v1128_v4 = vld [vmem:[#allocation10 + $0xc8] sm:$0xff] }
 0x199   : > { %1605 = vmatprep.subr.bf16.mxu1 %v1604_v28  ;;  %v2260_v7 = vld [vmem:[#allocation2] sm:$0xf]  ;;  %1090 = vmatprep.mubr.f32.mxu1 %v1958_v27  ;;  %v1104_v28 = vld [vmem:[#allocation10 + $0x8] sm:$0xff]  ;;  %v1654_v3 = vpack.c.bf16 %v1125_v2, %v1123_v1 }
 0x19a   : > { %v863_v6 = vrot.slane %v862_v5, 1  ;;  %1773 = vrcp.f32 %v862_v5  ;;  %v1632_v31 = vpack.c.bf16 %v1106_v29, %v1104_v28  ;;  %v1130_v5 = vld [vmem:[#allocation10 + $0xd8] sm:$0xff] }
 0x19b   : > { %1595 = vmatpush3.bf16.msra.mxu0 %v1594_v15  ;;  %v2262_v9 = vld [vmem:[#allocation2 + $0x4] sm:$0xf] }
 0x19c   : > { %1597 = vmatprep.subr.bf16.mxu0 %v1596_v16  ;;  %1607 = vmatpush1.bf16.msra.mxu1 %v1606_v33  ;;  %1775 = vrcp.f32 %v863_v6  ;;  %v1108_v33 = vld [vmem:[#allocation10 + $0x28] sm:$0xff]  ;;  %v1656_v6 = vpack.c.bf16 %v1130_v5, %v1128_v4 }
 0x19d   : > { %1609 = vmatprep.subr.bf16.mxu1 %v1608_v34  ;;  %v1110_v34 = vld [vmem:[#allocation10 + $0x38] sm:$0xff] }
 0x19e   : > { %v1636_v36 = vpack.c.bf16 %v1110_v34, %v1108_v33 }
 0x19f   : > { %1599 = vmatpush3.bf16.msra.mxu0 %v1598_v19 }
 0x1a0   : > { %1611 = vmatpush1.bf16.msra.mxu1 %v1610_v39  ;;  %v1112_v39 = vld [vmem:[#allocation10 + $0x48] sm:$0xff]  ;;  %1633 = vmatprep.subr.bf16.mxu0 %v1632_v31 }
 0x1a1   : > { %1613 = vmatprep.subr.bf16.mxu1 %v1612_v40  ;;  %v1114_v40 = vld [vmem:[#allocation10 + $0x58] sm:$0xff] }
 0x1a2   : > { %v1640_v42 = vpack.c.bf16 %v1114_v40, %v1112_v39 }
 0x1a4   : > { %1615 = vmatpush1.bf16.msra.mxu1 %v1614_v45  ;;  %v1774_v8 = vpop.eup %1773  ;;  %v1642_v45 = vpack.c.bf16 %v1113_v44, %v1111_v43 }
 0x1a5   : > { %1617 = vmatprep.subr.bf16.mxu1 %v1616_v46  ;;  %v867_v10 = vmul.f32 %v1774_v8, %v2260_v7  ;;  %v1127_v8 = vld [vmem:[#allocation10 + $0xc0] sm:$0xff] }
 0x1a6   : > { %v1776_v13 = vpop.eup %1775 }
 0x1a7   : > { %v869_v14 = vmul.f32 %v1776_v13, %v2262_v9  ;;  %v911_v15 = vrot.slane %v867_v10, %v910_v11  ;;  %v907_v17 = vrot.slane %v867_v10, %v906_v12  ;;  %v1129_v10 = vld [vmem:[#allocation10 + $0xd0] sm:$0xff]  ;;  %v1134_v13 = vld [vmem:[#allocation10 + $0xf8] sm:$0xff] }
 0x1a8   : > { %1619 = vmatpush1.bf16.msra.mxu1 %v1618_v51  ;;  %v1644_v51 = vpack.c.bf16 %v1118_v50, %v1116_v49 }
 0x1a9   : > { %1621 = vmatprep.subr.bf16.mxu1 %v1620_v52  ;;  %v919_v16 = vrot.slane %v869_v14, %v910_v11  ;;  %v915_v18 = vrot.slane %v869_v14, %v906_v12  ;;  %v1115_v52 = vld [vmem:[#allocation10 + $0x60] sm:$0xff]  ;;  %v1658_v11 = vpack.c.bf16 %v1129_v10, %v1127_v8  ;;  %v1132_v12 = vld [vmem:[#allocation10 + $0xe8] sm:$0xff] }
 0x1aa   : > { %v1646_v54 = vpack.c.bf16 %v1117_v53, %v1115_v52  ;;  %v1660_v14 = vpack.c.bf16 %v1134_v13, %v1132_v12 }
 0x1ab   : > { %v921_v19 = vsel %vm801_vm0, %v919_v16, %v911_v15  ;;  %v920_v20 = vsel %vm801_vm0, %v915_v18, %v907_v17  ;;  %v1131_v15 = vld [vmem:[#allocation10 + $0xe0] sm:$0xff]  ;;  %v1133_v16 = vld [vmem:[#allocation10 + $0xf0] sm:$0xff]  ;;  %v1460_v18 = vld.sshfl [vmem:[#allocation3] sm:$0x33 pattern:$0x76325410] }
 0x1ac   : > { %1623 = vmatpush1.bf16.msra.mxu1 %v1622_v57  ;;  %988 = vmatprep.mubr.f32.mxu0 %v921_v19  ;;  %v1648_v57 = vpack.c.bf16 %v1122_v56, %v1120_v55  ;;  %v1662_v17 = vpack.c.bf16 %v1133_v16, %v1131_v15  ;;  %v1251_v19 = vcombine.high %v1460_v18, %v1460_v18 }
 0x1ad   : > { %1625 = vmatprep.subr.bf16.mxu1 %v1624_v58  ;;  %989 = vmatmul.mubr.f32.vlgmr.msra.gmra.mrb[0].mxu0 %v920_v20  ;;  %v1119_v58 = vld [vmem:[#allocation10 + $0x80] sm:$0xff]  ;;  %v1254_v20 = vsel %vm848_vm4, %v1460_v18, 0.0 }
 0x1ae   : > { %1199 = vmatprep.mubr.f32.mxu0 %v1958_v27  ;;  %1635 = vmatpush1.bf16.msra.mxu0 %v1634_v35  ;;  %v1650_v60 = vpack.c.bf16 %v1121_v59, %v1119_v58  ;;  %v1255_v21 = vsel %vm848_vm4, %v1251_v19, 0.0 }
 0x1af   : > { %1637 = vmatprep.subr.bf16.mxu0 %v1636_v36  ;;  %v1256_v22 = vadd.f32 %v1255_v21, %v1254_v20 }
 0x1b0   : > { %1627 = vmatpush1.bf16.msra.mxu1 %v1626_v61  ;;  %v1124_v61 = vld [vmem:[#allocation10 + $0xa8] sm:$0xff] }
 0x1b1   : > { %1629 = vmatprep.subr.bf16.mxu1 %v1628_v23  ;;  %v1652_v0 = vpack.c.bf16 %v1126_v63, %v1124_v61  ;;  %1257 = vadd.xlane.f32.xlu1 %v1256_v22 }
 0x1b2   : > { %1639 = vmatpush1.bf16.msra.mxu0 %v1638_v41  ;;  %v1270_v41 = vsub.s32 1, %v2245_v62 }
 0x1b3   : > { %1641 = vmatprep.subr.bf16.mxu0 %v1640_v42  ;;  %v1274_v42 = vsub.s32 3, %v2245_v62 }
 0x1b4   : > { %1631 = vmatpush1.bf16.msra.mxu1 %v1630_v26  ;;  %v1271_v43 = vrot.slane %v2260_v7, %v1270_v41  ;;  %v1279_v44 = vrot.slane %v2262_v9, %v1270_v41 }
 0x1b6   : > { %1643 = vmatpush1.bf16.msra.mxu0 %v1642_v45  ;;  %v1275_v45 = vrot.slane %v2260_v7, %v1274_v42 }
 0x1b7   : > { %1645 = vmatprep.subr.bf16.mxu0 %v1644_v51 }
 0x1ba   : > { %1647 = vmatpush1.bf16.msra.mxu0 %v1646_v54 }
 0x1bb   : > { %1649 = vmatprep.subr.bf16.mxu0 %v1648_v57 }
 0x1be   : > { %1651 = vmatpush1.bf16.msra.mxu0 %v1650_v60 }
 0x1bf   : > { %1653 = vmatprep.subr.bf16.mxu0 %v1652_v0 }
 0x1c2   : > { %1655 = vmatpush1.bf16.msra.mxu0 %v1654_v3 }
 0x1c3   : > { %1657 = vmatprep.subr.bf16.mxu0 %v1656_v6 }
 0x1c6   : > { %1659 = vmatpush1.bf16.msra.mxu0 %v1658_v11 }
 0x1c7   : > { %1661 = vmatprep.subr.bf16.mxu0 %v1660_v14 }
 0x1ca   : > { %1663 = vmatpush1.bf16.msra.mxu0 %v1662_v17 }
 0x23e   : > { %v1258_v59 = vpop.xlane.xlu1 %1257 }
 0x23f   : > { %v1259_v60 = vrot.slane %v1258_v59, 4 }
 0x241   : > { %v1260_v61 = vadd.f32 %v1259_v60, %v1258_v59 }
 0x243   : > { %v1261_v63 = vrot.slane %v1260_v61, 2 }
 0x245   : > { %v1262_v2 = vadd.f32 %v1261_v63, %v1260_v61 }
 0x247   : > { %v1263_v5 = vrot.slane %v1262_v2, 1 }
 0x249   : > { %v1264_v10 = vadd.f32 %v1263_v5, %v1262_v2 }
 0x280   : > { %v1501_v46 = vpop.f32.mrb[0].mxu0 }
 0x281   : > { %v1502_v47 = vpop.f32.mrb[1].mxu0 }
 0x282   : > { %v1503_v48 = vadd.f32 %v1502_v47, %v1501_v46  ;;  %v1283_v46 = vrot.slane %v2262_v9, %v1274_v42  ;;  %v1284_v47 = vsel %vm801_vm0, %v1279_v44, %v1271_v43 }
 0x284   : > { %1091 = vmatmul.mubr.f32.vlgmr.msra.gmra.mrb[0].mxu1 %v1503_v48  ;;  %v1285_v48 = vsel %vm801_vm0, %v1283_v46, %v1275_v45 }
 0x357   : > { %v1092_v23 = vpop.f32.mrb[0].mxu1 }
 0x358   : > { %v1094_v24 = vpop.f32.mrb[1].mxu1  ;;  %v1218_v28 = vmul.f32 %v1092_v23, %v1092_v23 }
 0x359   : > { %v1098_v25 = vmul.f32 0.5, %v1094_v24  ;;  %v1219_v26 = vmul.f32 1.442695, %v1094_v24 }
 0x35b   : > { %v1099_v27 = vmul.f32 1.442695, %v1098_v25  ;;  %1777 = vpow2.f32 %v1219_v26 }
 0x35d   : > { %1779 = vpow2.f32 %v1099_v27 }
 0x365   : > { %v1778_v29 = vpop.eup %1777 }
 0x366   : > { %v1221_v31 = vadd.f32 %v1778_v29, %v1218_v28 }
 0x367   : > { %v1780_v32 = vpop.eup %1779 }
 0x368   : > { %v1222_v33 = vsub.f32 %v1221_v31, %v1094_v24  ;;  %v1101_v34 = vmul.f32 %v1780_v32, %v1097_v30 }
 0x36a   : > { %v1459_v35 = vadd.f32 -1.0, %v1222_v33  ;;  %v1102_v36 = vadd.f32 %v1101_v34, %v1092_v23 }
 0x36c   : > { %1200 = vmatmul.mubr.f32.vlgmr.msra.gmra.mrb[2].mxu0 %v1102_v36  ;;  %v1224_v37 = vsel %vm848_vm4, %v1459_v35, 0.0 }
 0x36d   : > { %1225 = vadd.xlane.f32.xlu0 %v1224_v37 }
 0x3fa   : > { %v1226_v38 = vpop.xlane.xlu0 %1225 }
 0x3fb   : > { %v1227_v39 = vmul.f32 0.5, %v1226_v38 }
 0x3fd   : > { %v1229_v40 = vsel %vm1228_vm5, %v1227_v39, 0.0 }
 0x3fe   : > { %1230 = vadd.xlane.f32.xlu1 %v1229_v40 }
 0x43f   : > { %v1201_v49 = vpop.f32.mrb[2].mxu0 }
 0x440   : > { %v1288_v50 = vmul.f32 %v1284_v47, %v1201_v49  ;;  %v1304_v51 = vmul.f32 %v1201_v49, %v1201_v49  ;;  %v1203_v52 = vpop.f32.mrb[3].mxu0 }
 0x441   : > { %v1208_v53 = vcombine.low %v1201_v49, %v1203_v52  ;;  %v1289_v54 = vmul.f32 %v1285_v48, %v1203_v52  ;;  %v1305_v55 = vmul.f32 %v1203_v52, %v1203_v52 }
 0x442   : > { %v1306_v62 = vsel %vm848_vm4, %v1304_v51, 0.0  ;;  %v1290_v56 = vsel %vm848_vm4, %v1288_v50, 0.0 }
 0x443   : > { %1458 = vst.sshfl [vmem:[%s2351_s6] sm:$0x33 pattern:$0x76325410] %v1208_v53  ;;  %v1307_v7 = vsel %vm848_vm4, %v1305_v55, 0.0  ;;  %v1291_v9 = vsel %vm848_vm4, %v1289_v54, 0.0 }
 0x444   : > { %v1308_v57 = vadd.f32 %v1307_v7, %v1306_v62  ;;  %v1292_v58 = vadd.f32 %v1291_v9, %v1290_v56 }
 0x446   : > { %1309 = vadd.xlane.f32.xlu1 %v1308_v57  ;;  %1293 = vadd.xlane.f32.xlu0 %v1292_v58 }
 0x48b   : > { %v1231_v0 = vpop.xlane.xlu1 %1230 }
 0x48c   : > { %v1232_v1 = vrot.slane %v1231_v0, 4 }
 0x48e   : > { %v1233_v3 = vadd.f32 %v1232_v1, %v1231_v0 }
 0x490   : > { %v1234_v4 = vrot.slane %v1233_v3, 2 }
 0x492   : > { %v1235_v6 = vadd.f32 %v1234_v4, %v1233_v3 }
 0x494   : > { %v1236_v8 = vrot.slane %v1235_v6, 1 }
 0x496   : > { %v1237_v11 = vadd.f32 %v1236_v8, %v1235_v6 }
 0x498   : > { %1664 = vpush %v1237_v11 }
 0x499   : > { %1666 = vpush %v1264_v10 }
 0x4c9   : > { %s1665_s22 = spop %1664 }
 0x4ca   : > { %s1239_s27 = smul.f32 0.5, %s1665_s22  ;;  %s1667_s23 = spop %1666 }
 0x4cc   : > { %1241 = sst [smem:[#allocation13]] %s1239_s27 }
 0x4d3   : > { %v1310_v12 = vpop.xlane.xlu1 %1309  ;;  %v1294_v13 = vpop.xlane.xlu0 %1293 }
 0x4d4   : > { %v1311_v14 = vrot.slane %v1310_v12, 4  ;;  %v1295_v15 = vrot.slane %v1294_v13, 4 }
 0x4d6   : > { %v1312_v16 = vadd.f32 %v1311_v14, %v1310_v12  ;;  %v1296_v17 = vadd.f32 %v1295_v15, %v1294_v13 }
 0x4d8   : > { %v1313_v18 = vrot.slane %v1312_v16, 2  ;;  %v1297_v19 = vrot.slane %v1296_v17, 2 }
 0x4da   : > { %v1314_v20 = vadd.f32 %v1313_v18, %v1312_v16  ;;  %v1298_v21 = vadd.f32 %v1297_v19, %v1296_v17 }
 0x4dc   : > { %v1299_v22 = vrot.slane %v1298_v21, 1  ;;  %v1315_v23 = vrot.slane %v1314_v20, 1 }
 0x4de   : > { %v1300_v24 = vadd.f32 %v1299_v22, %v1298_v21  ;;  %v1316_v25 = vadd.f32 %v1315_v23, %v1314_v20 }
 0x4e0   : > { %1668 = vpush %v1300_v24 }
 0x4e1   : > { %1670 = vpush %v1316_v25 }
 0x511   : > { %s1669_s19 = spop %1668 }
 0x512   : > { %s1302_s25 = smul.f32 2.0, %s1669_s19  ;;  %s1671_s26 = spop %1670 }
 0x513   : > { %s1318_s15 = smul.f32 256.0, %s1671_s26 }
 0x514   : > { %s1303_s14 = ssub.f32 %s1667_s23, %s1302_s25 }
 0x516   : > { %s1319_s16 = sadd.f32 %s1318_s15, %s1303_s14 }
 0x518   : > { %s1320_s2 = smul.f32 7.6293945e-06, %s1319_s16 }
 0x51a   : > { %1322 = sst [smem:[#allocation12]] %s1320_s2 }
 0x51b PF: > { %p1717_p3 = scmp.eq.s32.totalorder %s2025_s9, 1  ;;  %s1865_s24 = scalar_lea.hbm %s2352_s7, 16 }
 0x51c   : > { %p1866_p6 = scmp.ne.s32.totalorder %s2352_s7, %s1865_s24  ;;  %p1871_p13 = scmp.lt.u32.totalorder %s1865_s24, %s2352_s7 }
 0x51e   : > { %p1867_p7 = pnand %p1866_p6, %p1717_p3 }
 0x520   : > { %p1868_p11 = pneg %p1867_p7 }
 0x522   : > { %p1873_p0 = pnand %p1871_p13, %p1868_p11 }
 0x524   : > { %1876 = shalt.err (!%p1873_p0)
}
 0x525   : > { %s1959_s30 = smov [#allocation12]   ;;  %s1877_s23 = scalar_lea.hbm %s2353_s8, 16 }
 0x526   : > { %1694 = dma.smem_to_hbm (%p1717_p3), %s1959_s30, 16, %s2352_s7, [#allocation6]  }
 0x527   : > { %p1878_p12 = scmp.ne.s32.totalorder %s2353_s8, %s1877_s23  ;;  %p1883_p8 = scmp.lt.u32.totalorder %s1877_s23, %s2353_s8 }
 0x529   : > { %p1879_p5 = pnand %p1878_p12, %p1717_p3 }
 0x52b   : > { %p1880_p4 = pneg %p1879_p5 }
 0x52d   : > { %p1885_p9 = pnand %p1883_p8, %p1880_p4 }
 0x52f   : > { %1888 = shalt.err (!%p1885_p9)
}
 0x530   : > { %s1960_s15 = smov [#allocation13]  }
 0x531   : > { %1696 = dma.smem_to_hbm (%p1717_p3), %s1960_s15, 16, %s2353_s8, [#allocation14]  }
 0x532   : > { %1918 = dma.done.wait (%p1717_p3), [#allocation6], 16  }
 0x533   : > { %1920 = vsyncadd (%p1717_p3), [#allocation6], 4294967280 }
 0x534   : > { %1922 = dma.done.wait (%p1717_p3), [#allocation14], 16  }
 0x535   : > { %1924 = vsyncadd (%p1717_p3), [#allocation14], 4294967280 }
 0x536   : > { %1355 = sfence }
 0x537 PF: > { %s2377_s30 = sld [smem:[#allocation23_spill]]  ;;  %s2378_s13 = sld [smem:[#allocation24_spill]] }
 0x538   : > { %s2379_s27 = smov %s1931_s28  ;;  %s2380_s28 = smov %s1935_s29 }
 0x53d   : > { %p23_p10 = scmp.ge.s32.totalorder %s2377_s30, 4   ;;  %s2381_s29 = smov %s2378_s13 }
 0x53f   :  { %25 = sbr.rel (!%p23_p10) target bundleno = 9 (0x9), region = 126 }
 0x546   :  { %1361 = vsyncpa [#allocation5], 1 }
 0x547   :  { %1363 = vsyncpa [#allocation5 + $0x1], 1 }
 0x548   :  { %1364 = vsyncpa [#allocation8], 1 }
 0x549   :  { %1365 = vsyncpa [#allocation11], 1 }
 0x54a   :  { %1366 = vsyncpa [#allocation6], 1 }
 0x54b   :  { %1368 = vsyncpa [#allocation6 + $0x1], 1 }
 0x54c   :  { %1369 = vsyncpa [#allocation14], 1 }

</bundles_post_ra>
